<compile_context>
chip_gen: v5e
topology: v5e:2x2
jax: 0.10.0
libtpu: 0.0.40
codegen_flags: <defaults>
</compile_context>

<pallas_src>
import math
import functools

import jax
import jax.numpy as jnp
from jax.experimental import pallas as pl
from jax.experimental.pallas import tpu as pltpu

LN_EPS = 1e-5


# ----------------------------------------------------------------------------
# In-kernel helpers (traced inside the Pallas kernels)
# ----------------------------------------------------------------------------
def _layernorm(x, gamma, beta):
    mean = jnp.mean(x, axis=-1, keepdims=True)
    var = jnp.mean((x - mean) ** 2, axis=-1, keepdims=True)
    return (x - mean) * jax.lax.rsqrt(var + LN_EPS) * gamma + beta


def _project_heads(x, w_h, b_h):
    # x: (S, Din); w_h: (H, E, Din); b_h: (H, 1, E)  ->  (H, S, E)
    # Single packed projection (q pre-scaled), batched over heads.
    n_heads = w_h.shape[0]
    xb = jnp.broadcast_to(x, (n_heads,) + x.shape)
    y = jnp.einsum("hsd,hed->hse", xb, w_h, preferred_element_type=jnp.float32)
    return y + b_h


def _attn_heads(q3, k3, v3, wo_h, bo):
    # q3: (H, Sq, hd) already scaled by 1/sqrt(hd); k3/v3: (H, Sk, hd)
    # wo_h: (H, D, hd) per-head slice of the output projection; bo: (1, D)
    s = jnp.einsum("hqe,hke->hqk", q3, k3, preferred_element_type=jnp.float32)
    s = s - jnp.max(s, axis=-1, keepdims=True)
    e = jnp.exp(s)
    p = e * pl.reciprocal(jnp.sum(e, axis=-1, keepdims=True), approx=True)
    o3 = jnp.einsum("hqk,hke->hqe", p, v3, preferred_element_type=jnp.float32)
    # Output projection per head, summed over heads (replaces concat + big matmul).
    out = jnp.einsum("hqe,hje->hqj", o3, wo_h, preferred_element_type=jnp.float32)
    return jnp.sum(out, axis=0) + bo


# ----------------------------------------------------------------------------
# Kernels
# ----------------------------------------------------------------------------
def _cross_modal_kernel(
    xcat_ref, posv_ref, posa_ref,
    wcat_ref, bcat_ref,
    wvpk_ref, bvpk_ref, wapk_ref, bapk_ref,
    wo_va_ref, bo_va_ref, g_va_ref, be_va_ref,
    wo_av_ref, bo_av_ref, g_av_ref, be_av_ref,
    cls_ref, o_ref, *, n_heads, head_dim,
):
    D = n_heads * head_dim
    hd = head_dim

    # Fused video+audio modality projection: one (S, Vd+Ad) @ (Vd+Ad, 2D) matmul.
    xcat = xcat_ref[0]
    va = jnp.dot(xcat, wcat_ref[...], preferred_element_type=jnp.float32) + bcat_ref[...]
    v = va[:, :D] + posv_ref[0]     # pos-encoded video features
    a = va[:, D:] + posa_ref[0]     # pos-encoded audio features

    # Packed per-source projections:
    #   video rows -> [q_v2a (scaled) | k_a2v | v_a2v]
    #   audio rows -> [q_a2v (scaled) | k_v2a | v_v2a]
    pv = _project_heads(v, wvpk_ref[...], bvpk_ref[...])    # (H, S, 3*hd)
    pa = _project_heads(a, wapk_ref[...], bapk_ref[...])    # (H, S, 3*hd)

    # video -> audio cross attention (query = video, key/value = audio).
    attn_va = _attn_heads(pv[:, :, :hd], pa[:, :, hd:2 * hd], pa[:, :, 2 * hd:],
                          wo_va_ref[...], bo_va_ref[...])
    y_va = _layernorm(v + attn_va, g_va_ref[...], be_va_ref[...])

    # audio -> video cross attention (query = audio, key/value = video).
    attn_av = _attn_heads(pa[:, :, :hd], pv[:, :, hd:2 * hd], pv[:, :, 2 * hd:],
                          wo_av_ref[...], bo_av_ref[...])
    y_av = _layernorm(a + attn_av, g_av_ref[...], be_av_ref[...])

    fused = (y_va + y_av) * 0.5     # (S, D)

    # Write [CLS ; fused] directly (no XLA concat / extra HBM round trip).
    o_ref[0, pl.ds(0, 1), :] = cls_ref[...]
    o_ref[0, pl.ds(1, fused.shape[0]), :] = fused


def _encoder_layer_kernel(
    x_ref, wqkv_ref, bqkv_ref, wo_ref, bo_ref, g1_ref, be1_ref,
    w1_ref, b1_ref, w2_ref, b2_ref, g2_ref, be2_ref, o_ref,
    *, n_heads, head_dim,
):
    hd = head_dim
    x = x_ref[0]                                             # (S1, D)

    # Fused packed Q/K/V projection (q pre-scaled) + multi-head self-attention.
    qkv = _project_heads(x, wqkv_ref[...], bqkv_ref[...])    # (H, S1, 3*hd)
    attn = _attn_heads(qkv[:, :, :hd], qkv[:, :, hd:2 * hd], qkv[:, :, 2 * hd:],
                       wo_ref[...], bo_ref[...])
    x1 = _layernorm(x + attn, g1_ref[...], be1_ref[...])

    # Feed-forward (relu) + residual + LayerNorm, fused in the same kernel.
    h = jnp.dot(x1, w1_ref[...], preferred_element_type=jnp.float32) + b1_ref[...]
    h = jnp.maximum(h, 0.0)
    y = jnp.dot(h, w2_ref[...], preferred_element_type=jnp.float32) + b2_ref[...]
    o_ref[0] = _layernorm(x1 + y, g2_ref[...], be2_ref[...])


# ----------------------------------------------------------------------------
# Wrappers (pallas_call plumbing)
# ----------------------------------------------------------------------------
def _rep_spec(shape):
    nd = len(shape)
    return pl.BlockSpec(shape, lambda b, _nd=nd: (0,) * _nd)


def cross_modal_block(xcat, posv, posa, pk, *, n_heads, head_dim):
    B, S, Cin = xcat.shape
    D = n_heads * head_dim
    kernel = functools.partial(_cross_modal_kernel, n_heads=n_heads, head_dim=head_dim)

    def seq(f):
        return pl.BlockSpec((1, S, f), lambda b: (b, 0, 0))

    names = ["wcat", "bcat", "w_vpack", "b_vpack", "w_apack", "b_apack",
             "wo_v2a", "bo_v2a", "g_v2a", "be_v2a",
             "wo_a2v", "bo_a2v", "g_a2v", "be_a2v", "cls"]
    return pl.pallas_call(
        kernel,
        grid=(B,),
        in_specs=[seq(Cin), seq(D), seq(D)] + [_rep_spec(pk[n].shape) for n in names],
        out_specs=pl.BlockSpec((1, S + 1, D), lambda b: (b, 0, 0)),
        out_shape=jax.ShapeDtypeStruct((B, S + 1, D), jnp.float32),
        compiler_params=pltpu.CompilerParams(dimension_semantics=("parallel",)),
    )(xcat, posv, posa, *[pk[n] for n in names])


def encoder_layer(x, lp, *, n_heads, head_dim):
    B, S1, D = x.shape
    kernel = functools.partial(_encoder_layer_kernel, n_heads=n_heads, head_dim=head_dim)
    seq = pl.BlockSpec((1, S1, D), lambda b: (b, 0, 0))
    names = ["wqkv", "bqkv", "wo", "bo", "g1", "be1",
             "w1", "b1", "w2", "b2", "g2", "be2"]
    return pl.pallas_call(
        kernel,
        grid=(B,),
        in_specs=[seq] + [_rep_spec(lp[n].shape) for n in names],
        out_specs=seq,
        out_shape=jax.ShapeDtypeStruct((B, S1, D), jnp.float32),
        compiler_params=pltpu.CompilerParams(dimension_semantics=("parallel",)),
    )(x, *[lp[n] for n in names])


# ----------------------------------------------------------------------------
# Parameter init (PyTorch layout, mirrors the module's __init__/_init_weights)
# ----------------------------------------------------------------------------
def init_params(key, *, video_dim, audio_dim, d_model, n_heads, num_layers,
                dim_feedforward, output_dim, max_seq_length):
    keys = iter(jax.random.split(key, 128))

    def xavier(shape):
        fan_out, fan_in = shape
        limit = math.sqrt(6.0 / (fan_in + fan_out))
        return jax.random.uniform(next(keys), shape, jnp.float32, -limit, limit)

    def mha_params():
        in_proj = xavier((3 * d_model, d_model))
        return dict(
            wq=in_proj[:d_model],
            wk=in_proj[d_model:2 * d_model],
            wv=in_proj[2 * d_model:],
            bq=jnp.zeros((d_model,), jnp.float32),
            bk=jnp.zeros((d_model,), jnp.float32),
            bv=jnp.zeros((d_model,), jnp.float32),
            wo=xavier((d_model, d_model)),
            bo=jnp.zeros((d_model,), jnp.float32),
            gamma=jnp.ones((d_model,), jnp.float32),
            beta=jnp.zeros((d_model,), jnp.float32),
        )

    return dict(
        video_proj_w=xavier((d_model, video_dim)),
        video_proj_b=jnp.zeros((d_model,), jnp.float32),
        audio_proj_w=xavier((d_model, audio_dim)),
        audio_proj_b=jnp.zeros((d_model,), jnp.float32),
        pos_emb=xavier((max_seq_length, d_model)),
        ca_v2a=mha_params(),
        ca_a2v=mha_params(),
        cls_token=jax.random.normal(next(keys), (1, 1, d_model), jnp.float32),
        out_w=xavier((output_dim, d_model)),
        out_b=jnp.zeros((output_dim,), jnp.float32),
        enc_layers=[
            dict(
                attn=mha_params(),
                ffn=dict(
                    w1=xavier((dim_feedforward, d_model)),
                    b1=jnp.zeros((dim_feedforward,), jnp.float32),
                    w2=xavier((d_model, dim_feedforward)),
                    b2=jnp.zeros((d_model,), jnp.float32),
                    gamma=jnp.ones((d_model,), jnp.float32),
                    beta=jnp.zeros((d_model,), jnp.float32),
                ),
            )
            for _ in range(num_layers)
        ],
    )


# ----------------------------------------------------------------------------
# One-time weight packing: pre-transpose, pre-scale q by 1/sqrt(hd), pack QKV
# per head, block-diagonal modality projection.  Done once, outside the forward.
# ----------------------------------------------------------------------------
def pack_params(p, n_heads):
    D = p["video_proj_w"].shape[0]
    hd = D // n_heads
    scale = 1.0 / math.sqrt(hd)
    Vd = p["video_proj_w"].shape[1]
    Ad = p["audio_proj_w"].shape[1]

    def heads(w):          # (n_out, Din) -> (H, n_out//H, Din)
        return w.reshape(n_heads, -1, w.shape[-1])

    def pack_qkv(wq, bq, wk, bk, wv, bv):
        w = jnp.concatenate([heads(wq * scale), heads(wk), heads(wv)], axis=1)  # (H,3hd,D)
        b = jnp.concatenate(
            [(bq * scale).reshape(n_heads, 1, hd),
             bk.reshape(n_heads, 1, hd),
             bv.reshape(n_heads, 1, hd)], axis=2)                                # (H,1,3hd)
        return w, b

    def out_heads(wo):     # (D, D) -> (H, D, hd); wo_h[h, j, e] = wo[j, h*hd+e]
        return wo.reshape(D, n_heads, hd).transpose(1, 0, 2)

    # Block-diagonal fused [video|audio] modality projection.
    wcat = jnp.zeros((Vd + Ad, 2 * D), jnp.float32)
    wcat = wcat.at[:Vd, :D].set(p["video_proj_w"].T)
    wcat = wcat.at[Vd:, D:].set(p["audio_proj_w"].T)
    bcat = jnp.concatenate([p["video_proj_b"], p["audio_proj_b"]]).reshape(1, 2 * D)

    v2a, a2v = p["ca_v2a"], p["ca_a2v"]
    # video source feeds: query of v2a, key/value of a2v.
    w_vpack, b_vpack = pack_qkv(v2a["wq"], v2a["bq"], a2v["wk"], a2v["bk"],
                                a2v["wv"], a2v["bv"])
    # audio source feeds: query of a2v, key/value of v2a.
    w_apack, b_apack = pack_qkv(a2v["wq"], a2v["bq"], v2a["wk"], v2a["bk"],
                                v2a["wv"], v2a["bv"])

    packed = dict(
        wcat=wcat, bcat=bcat,
        w_vpack=w_vpack, b_vpack=b_vpack,
        w_apack=w_apack, b_apack=b_apack,
        wo_v2a=out_heads(v2a["wo"]), bo_v2a=v2a["bo"].reshape(1, D),
        g_v2a=v2a["gamma"].reshape(1, D), be_v2a=v2a["beta"].reshape(1, D),
        wo_a2v=out_heads(a2v["wo"]), bo_a2v=a2v["bo"].reshape(1, D),
        g_a2v=a2v["gamma"].reshape(1, D), be_a2v=a2v["beta"].reshape(1, D),
        cls=p["cls_token"].reshape(1, D),
        pos_emb=p["pos_emb"],
        out_w_t=p["out_w"].T,                 # (D, output_dim)
        out_b=p["out_b"].reshape(1, -1),
        layers=[],
    )
    for layer in p["enc_layers"]:
        at, ff = layer["attn"], layer["ffn"]
        wqkv, bqkv = pack_qkv(at["wq"], at["bq"], at["wk"], at["bk"], at["wv"], at["bv"])
        packed["layers"].append(dict(
            wqkv=wqkv, bqkv=bqkv,
            wo=out_heads(at["wo"]), bo=at["bo"].reshape(1, D),
            g1=at["gamma"].reshape(1, D), be1=at["beta"].reshape(1, D),
            w1=ff["w1"].T, b1=ff["b1"].reshape(1, -1),
            w2=ff["w2"].T, b2=ff["b2"].reshape(1, -1),
            g2=ff["gamma"].reshape(1, D), be2=ff["beta"].reshape(1, D),
        ))
    return packed


# ----------------------------------------------------------------------------
# Forward (mask / key_padding_mask = None, dropout = identity)
# ----------------------------------------------------------------------------
def multimodal_transformer_forward(packed, video, audio, video_pos, audio_pos,
                                   *, n_heads, max_offset):
    D = packed["cls"].shape[-1]
    hd = D // n_heads

    # Plain-JAX glue: positional-embedding gather + feature concat for the
    # block-diagonal modality projection inside the fused kernel.
    posv = packed["pos_emb"][video_pos]
    posa = packed["pos_emb"][audio_pos]
    xcat = jnp.concatenate([video, audio], axis=-1)

    # Fused: modality proj + pos-enc + both cross-attentions + average + CLS.
    x = cross_modal_block(xcat, posv, posa, packed, n_heads=n_heads, head_dim=hd)

    # Encoder layers: attention + FFN fused per layer, per batch element.
    for lp in packed["layers"]:
        x = encoder_layer(x, lp, n_heads=n_heads, head_dim=hd)

    # Tiny output head (B,D)x(D,out): left to plain XLA per perf review.
    cls_out = x[:, 0, :]
    return jnp.tanh(cls_out @ packed["out_w_t"] + packed["out_b"]) * float(max_offset)


# ----------------------------------------------------------------------------
if __name__ == "__main__":
    batch = 2
    seq = 8
    video_dim = 12
    audio_dim = 20
    d_model = 32
    n_heads = 4
    num_layers = 2
    dim_feedforward = 64
    output_dim = 2
    max_seq_length = 256
    max_offset = 15

    key = jax.random.PRNGKey(0)
    pkey, vkey, akey = jax.random.split(key, 3)

    params = init_params(
        pkey,
        video_dim=video_dim,
        audio_dim=audio_dim,
        d_model=d_model,
        n_heads=n_heads,
        num_layers=num_layers,
        dim_feedforward=dim_feedforward,
        output_dim=output_dim,
        max_seq_length=max_seq_length,
    )
    packed = pack_params(params, n_heads)

    video = jax.random.normal(vkey, (batch, seq, video_dim), jnp.float32)
    audio = jax.random.normal(akey, (batch, seq, audio_dim), jnp.float32)
    video_pos = jnp.broadcast_to(jnp.arange(seq, dtype=jnp.int32), (batch, seq))
    audio_pos = jnp.broadcast_to(jnp.arange(seq, dtype=jnp.int32), (batch, seq))

    out = multimodal_transformer_forward(
        packed, video, audio, video_pos, audio_pos,
        n_heads=n_heads, max_offset=max_offset,
    )
    out = jax.block_until_ready(out)
    assert out.shape == (batch, output_dim), out.shape
    assert bool(jnp.all(jnp.isfinite(out)))
    print("KERNEL_OK")
</pallas_src>

<mosaic_0001>
module attributes {stable_mosaic.version = 11 : i64} {
  func.func @_cross_modal_kernel(%arg0: i32, %arg1: memref<1x8x32xf32, #tpu.memory_space<vmem>>, %arg2: memref<1x8x32xf32, #tpu.memory_space<vmem>>, %arg3: memref<1x8x32xf32, #tpu.memory_space<vmem>>, %arg4: memref<32x64xf32, #tpu.memory_space<vmem>>, %arg5: memref<1x64xf32, #tpu.memory_space<vmem>>, %arg6: memref<4x24x32xf32, #tpu.memory_space<vmem>>, %arg7: memref<4x1x24xf32, #tpu.memory_space<vmem>>, %arg8: memref<4x24x32xf32, #tpu.memory_space<vmem>>, %arg9: memref<4x1x24xf32, #tpu.memory_space<vmem>>, %arg10: memref<4x32x8xf32, #tpu.memory_space<vmem>>, %arg11: memref<1x32xf32, #tpu.memory_space<vmem>>, %arg12: memref<1x32xf32, #tpu.memory_space<vmem>>, %arg13: memref<1x32xf32, #tpu.memory_space<vmem>>, %arg14: memref<4x32x8xf32, #tpu.memory_space<vmem>>, %arg15: memref<1x32xf32, #tpu.memory_space<vmem>>, %arg16: memref<1x32xf32, #tpu.memory_space<vmem>>, %arg17: memref<1x32xf32, #tpu.memory_space<vmem>>, %arg18: memref<1x32xf32, #tpu.memory_space<vmem>>, %arg19: memref<1x9x32xf32, #tpu.memory_space<vmem>>) attributes {dimension_semantics = [#tpu.dimension_semantics<parallel>], iteration_bounds = array<i64: 2>, scalar_prefetch = 0 : i64, scratch_operands = 0 : i64, tpu.core_type = #tpu.core_type<tc>, window_params = [{transform_indices = @transform_0, window_bounds = array<i64: 1, 8, 32>}, {transform_indices = @transform_1, window_bounds = array<i64: 1, 8, 32>}, {transform_indices = @transform_2, window_bounds = array<i64: 1, 8, 32>}, {pipeline_mode = #tpu.pipeline_mode<synchronous>, transform_indices = @transform_3, window_bounds = array<i64: 32, 64>}, {pipeline_mode = #tpu.pipeline_mode<synchronous>, transform_indices = @transform_4, window_bounds = array<i64: 1, 64>}, {pipeline_mode = #tpu.pipeline_mode<synchronous>, transform_indices = @transform_5, window_bounds = array<i64: 4, 24, 32>}, {pipeline_mode = #tpu.pipeline_mode<synchronous>, transform_indices = @transform_6, window_bounds = array<i64: 4, 1, 24>}, {pipeline_mode = #tpu.pipeline_mode<synchronous>, transform_indices = @transform_7, window_bounds = array<i64: 4, 24, 32>}, {pipeline_mode = #tpu.pipeline_mode<synchronous>, transform_indices = @transform_8, window_bounds = array<i64: 4, 1, 24>}, {pipeline_mode = #tpu.pipeline_mode<synchronous>, transform_indices = @transform_9, window_bounds = array<i64: 4, 32, 8>}, {pipeline_mode = #tpu.pipeline_mode<synchronous>, transform_indices = @transform_10, window_bounds = array<i64: 1, 32>}, {pipeline_mode = #tpu.pipeline_mode<synchronous>, transform_indices = @transform_11, window_bounds = array<i64: 1, 32>}, {pipeline_mode = #tpu.pipeline_mode<synchronous>, transform_indices = @transform_12, window_bounds = array<i64: 1, 32>}, {pipeline_mode = #tpu.pipeline_mode<synchronous>, transform_indices = @transform_13, window_bounds = array<i64: 4, 32, 8>}, {pipeline_mode = #tpu.pipeline_mode<synchronous>, transform_indices = @transform_14, window_bounds = array<i64: 1, 32>}, {pipeline_mode = #tpu.pipeline_mode<synchronous>, transform_indices = @transform_15, window_bounds = array<i64: 1, 32>}, {pipeline_mode = #tpu.pipeline_mode<synchronous>, transform_indices = @transform_16, window_bounds = array<i64: 1, 32>}, {pipeline_mode = #tpu.pipeline_mode<synchronous>, transform_indices = @transform_17, window_bounds = array<i64: 1, 32>}, {transform_indices = @transform_18, window_bounds = array<i64: 1, 9, 32>}]} {
    %c0 = arith.constant 0 : index
    %c0_0 = arith.constant 0 : index
    %c0_1 = arith.constant 0 : index
    %0 = vector.load %arg1[%c0, %c0_0, %c0_1] : memref<1x8x32xf32, #tpu.memory_space<vmem>>, vector<1x8x32xf32>
    %1 = vector.shape_cast %0 : vector<1x8x32xf32> to vector<8x32xf32>
    %c0_2 = arith.constant 0 : index
    %c0_3 = arith.constant 0 : index
    %2 = vector.load %arg4[%c0_2, %c0_3] : memref<32x64xf32, #tpu.memory_space<vmem>>, vector<32x64xf32>
    %cst = arith.constant dense<0.000000e+00> : vector<8x64xf32>
    %3 = tpu.matmul %1, %2, %cst {dimension_numbers = #tpu.dot_dimension_numbers<[1], [0], [0], [1], [0, 0, 1, 1], [], []>} : vector<8x32xf32>, vector<32x64xf32>, vector<8x64xf32> -> vector<8x64xf32>
    %c0_4 = arith.constant 0 : index
    %c0_5 = arith.constant 0 : index
    %4 = vector.load %arg5[%c0_4, %c0_5] : memref<1x64xf32, #tpu.memory_space<vmem>>, vector<1x64xf32>
    %5 = vector.broadcast %4 : vector<1x64xf32> to vector<8x64xf32>
    %6 = arith.addf %3, %5 : vector<8x64xf32>
    %7 = vector.extract_strided_slice %6 {offsets = [0, 0], sizes = [8, 32], strides = [1, 1]} : vector<8x64xf32> to vector<8x32xf32>
    %c0_6 = arith.constant 0 : index
    %c0_7 = arith.constant 0 : index
    %c0_8 = arith.constant 0 : index
    %8 = vector.load %arg2[%c0_6, %c0_7, %c0_8] : memref<1x8x32xf32, #tpu.memory_space<vmem>>, vector<1x8x32xf32>
    %9 = vector.shape_cast %8 : vector<1x8x32xf32> to vector<8x32xf32>
    %10 = arith.addf %7, %9 : vector<8x32xf32>
    %11 = vector.extract_strided_slice %6 {offsets = [0, 32], sizes = [8, 32], strides = [1, 1]} : vector<8x64xf32> to vector<8x32xf32>
    %c0_9 = arith.constant 0 : index
    %c0_10 = arith.constant 0 : index
    %c0_11 = arith.constant 0 : index
    %12 = vector.load %arg3[%c0_9, %c0_10, %c0_11] : memref<1x8x32xf32, #tpu.memory_space<vmem>>, vector<1x8x32xf32>
    %13 = vector.shape_cast %12 : vector<1x8x32xf32> to vector<8x32xf32>
    %14 = arith.addf %11, %13 : vector<8x32xf32>
    %c0_12 = arith.constant 0 : index
    %c0_13 = arith.constant 0 : index
    %c0_14 = arith.constant 0 : index
    %15 = vector.load %arg6[%c0_12, %c0_13, %c0_14] : memref<4x24x32xf32, #tpu.memory_space<vmem>>, vector<4x24x32xf32>
    %c0_15 = arith.constant 0 : index
    %c0_16 = arith.constant 0 : index
    %c0_17 = arith.constant 0 : index
    %16 = vector.load %arg7[%c0_15, %c0_16, %c0_17] : memref<4x1x24xf32, #tpu.memory_space<vmem>>, vector<4x1x24xf32>
    %17 = vector.shape_cast %10 : vector<8x32xf32> to vector<1x8x32xf32>
    %18 = vector.broadcast %17 : vector<1x8x32xf32> to vector<4x8x32xf32>
    "tpu.trace_start"() <{level = 10 : i32, message = "hsd,hed->hse"}> : () -> ()
    %cst_18 = arith.constant dense<0.000000e+00> : vector<4x8x24xf32>
    %19 = tpu.matmul %18, %15, %cst_18 {dimension_numbers = #tpu.dot_dimension_numbers<[2], [2], [1], [1], [0, 0, 0, 1, 1, 1], [0], [0]>} : vector<4x8x32xf32>, vector<4x24x32xf32>, vector<4x8x24xf32> -> vector<4x8x24xf32>
    "tpu.trace_stop"() : () -> ()
    %20 = vector.broadcast %16 : vector<4x1x24xf32> to vector<4x8x24xf32>
    %21 = arith.addf %19, %20 : vector<4x8x24xf32>
    %c0_19 = arith.constant 0 : index
    %c0_20 = arith.constant 0 : index
    %c0_21 = arith.constant 0 : index
    %22 = vector.load %arg8[%c0_19, %c0_20, %c0_21] : memref<4x24x32xf32, #tpu.memory_space<vmem>>, vector<4x24x32xf32>
    %c0_22 = arith.constant 0 : index
    %c0_23 = arith.constant 0 : index
    %c0_24 = arith.constant 0 : index
    %23 = vector.load %arg9[%c0_22, %c0_23, %c0_24] : memref<4x1x24xf32, #tpu.memory_space<vmem>>, vector<4x1x24xf32>
    %24 = vector.shape_cast %14 : vector<8x32xf32> to vector<1x8x32xf32>
    %25 = vector.broadcast %24 : vector<1x8x32xf32> to vector<4x8x32xf32>
    "tpu.trace_start"() <{level = 10 : i32, message = "hsd,hed->hse"}> : () -> ()
    %cst_25 = arith.constant dense<0.000000e+00> : vector<4x8x24xf32>
    %26 = tpu.matmul %25, %22, %cst_25 {dimension_numbers = #tpu.dot_dimension_numbers<[2], [2], [1], [1], [0, 0, 0, 1, 1, 1], [0], [0]>} : vector<4x8x32xf32>, vector<4x24x32xf32>, vector<4x8x24xf32> -> vector<4x8x24xf32>
    "tpu.trace_stop"() : () -> ()
    %27 = vector.broadcast %23 : vector<4x1x24xf32> to vector<4x8x24xf32>
    %28 = arith.addf %26, %27 : vector<4x8x24xf32>
    %29 = vector.extract_strided_slice %21 {offsets = [0, 0, 0], sizes = [4, 8, 8], strides = [1, 1, 1]} : vector<4x8x24xf32> to vector<4x8x8xf32>
    %30 = vector.extract_strided_slice %28 {offsets = [0, 0, 8], sizes = [4, 8, 8], strides = [1, 1, 1]} : vector<4x8x24xf32> to vector<4x8x8xf32>
    %31 = vector.extract_strided_slice %28 {offsets = [0, 0, 16], sizes = [4, 8, 8], strides = [1, 1, 1]} : vector<4x8x24xf32> to vector<4x8x8xf32>
    %c0_26 = arith.constant 0 : index
    %c0_27 = arith.constant 0 : index
    %c0_28 = arith.constant 0 : index
    %32 = vector.load %arg10[%c0_26, %c0_27, %c0_28] : memref<4x32x8xf32, #tpu.memory_space<vmem>>, vector<4x32x8xf32>
    %c0_29 = arith.constant 0 : index
    %c0_30 = arith.constant 0 : index
    %33 = vector.load %arg11[%c0_29, %c0_30] : memref<1x32xf32, #tpu.memory_space<vmem>>, vector<1x32xf32>
    "tpu.trace_start"() <{level = 10 : i32, message = "hqe,hke->hqk"}> : () -> ()
    %cst_31 = arith.constant dense<0.000000e+00> : vector<4x8x8xf32>
    %34 = tpu.matmul %29, %30, %cst_31 {dimension_numbers = #tpu.dot_dimension_numbers<[2], [2], [1], [1], [0, 0, 0, 1, 1, 1], [0], [0]>} : vector<4x8x8xf32>, vector<4x8x8xf32>, vector<4x8x8xf32> -> vector<4x8x8xf32>
    "tpu.trace_stop"() : () -> ()
    %cst_32 = arith.constant dense<0xFF800000> : vector<4x8xf32>
    %35 = vector.multi_reduction <maximumf>, %34, %cst_32 [2] : vector<4x8x8xf32> to vector<4x8xf32>
    %36 = vector.shape_cast %35 : vector<4x8xf32> to vector<4x8x1xf32>
    %37 = vector.broadcast %36 : vector<4x8x1xf32> to vector<4x8x8xf32>
    %38 = arith.subf %34, %37 : vector<4x8x8xf32>
    %39 = math.exp %38 : vector<4x8x8xf32>
    %cst_33 = arith.constant dense<0.000000e+00> : vector<4x8xf32>
    %40 = vector.multi_reduction <add>, %39, %cst_33 [2] : vector<4x8x8xf32> to vector<4x8xf32>
    %41 = vector.shape_cast %40 : vector<4x8xf32> to vector<4x8x1xf32>
    %42 = tpu.reciprocal %41 {approx = true} : vector<4x8x1xf32> -> vector<4x8x1xf32>
    %43 = vector.broadcast %42 : vector<4x8x1xf32> to vector<4x8x8xf32>
    %44 = arith.mulf %39, %43 : vector<4x8x8xf32>
    "tpu.trace_start"() <{level = 10 : i32, message = "hqk,hke->hqe"}> : () -> ()
    %cst_34 = arith.constant dense<0.000000e+00> : vector<4x8x8xf32>
    %45 = tpu.matmul %44, %31, %cst_34 {dimension_numbers = #tpu.dot_dimension_numbers<[2], [1], [1], [2], [0, 0, 0, 1, 1, 2], [0], [0]>} : vector<4x8x8xf32>, vector<4x8x8xf32>, vector<4x8x8xf32> -> vector<4x8x8xf32>
    "tpu.trace_stop"() : () -> ()
    "tpu.trace_start"() <{level = 10 : i32, message = "hqe,hje->hqj"}> : () -> ()
    %cst_35 = arith.constant dense<0.000000e+00> : vector<4x8x32xf32>
    %46 = tpu.matmul %45, %32, %cst_35 {dimension_numbers = #tpu.dot_dimension_numbers<[2], [2], [1], [1], [0, 0, 0, 1, 1, 1], [0], [0]>} : vector<4x8x8xf32>, vector<4x32x8xf32>, vector<4x8x32xf32> -> vector<4x8x32xf32>
    "tpu.trace_stop"() : () -> ()
    %cst_36 = arith.constant dense<0.000000e+00> : vector<8x32xf32>
    %47 = vector.multi_reduction <add>, %46, %cst_36 [0] : vector<4x8x32xf32> to vector<8x32xf32>
    %48 = vector.broadcast %33 : vector<1x32xf32> to vector<8x32xf32>
    %49 = arith.addf %47, %48 : vector<8x32xf32>
    %50 = arith.addf %10, %49 : vector<8x32xf32>
    %c0_37 = arith.constant 0 : index
    %c0_38 = arith.constant 0 : index
    %51 = vector.load %arg12[%c0_37, %c0_38] : memref<1x32xf32, #tpu.memory_space<vmem>>, vector<1x32xf32>
    %c0_39 = arith.constant 0 : index
    %c0_40 = arith.constant 0 : index
    %52 = vector.load %arg13[%c0_39, %c0_40] : memref<1x32xf32, #tpu.memory_space<vmem>>, vector<1x32xf32>
    %cst_41 = arith.constant dense<0.000000e+00> : vector<8xf32>
    %53 = vector.multi_reduction <add>, %50, %cst_41 [1] : vector<8x32xf32> to vector<8xf32>
    %54 = vector.shape_cast %53 : vector<8xf32> to vector<8x1xf32>
    %cst_42 = arith.constant 3.200000e+01 : f32
    %55 = vector.broadcast %cst_42 : f32 to vector<8x1xf32>
    %56 = arith.divf %54, %55 : vector<8x1xf32>
    %57 = vector.broadcast %56 : vector<8x1xf32> to vector<8x32xf32>
    %58 = arith.subf %50, %57 : vector<8x32xf32>
    %59 = arith.mulf %58, %58 : vector<8x32xf32>
    %cst_43 = arith.constant dense<0.000000e+00> : vector<8xf32>
    %60 = vector.multi_reduction <add>, %59, %cst_43 [1] : vector<8x32xf32> to vector<8xf32>
    %61 = vector.shape_cast %60 : vector<8xf32> to vector<8x1xf32>
    %cst_44 = arith.constant 3.200000e+01 : f32
    %62 = vector.broadcast %cst_44 : f32 to vector<8x1xf32>
    %63 = arith.divf %61, %62 : vector<8x1xf32>
    %64 = vector.broadcast %56 : vector<8x1xf32> to vector<8x32xf32>
    %65 = arith.subf %50, %64 : vector<8x32xf32>
    %cst_45 = arith.constant 9.99999974E-6 : f32
    %66 = vector.broadcast %cst_45 : f32 to vector<8x1xf32>
    %67 = arith.addf %63, %66 : vector<8x1xf32>
    %68 = math.rsqrt %67 : vector<8x1xf32>
    %69 = vector.broadcast %68 : vector<8x1xf32> to vector<8x32xf32>
    %70 = arith.mulf %65, %69 : vector<8x32xf32>
    %71 = vector.broadcast %51 : vector<1x32xf32> to vector<8x32xf32>
    %72 = arith.mulf %70, %71 : vector<8x32xf32>
    %73 = vector.broadcast %52 : vector<1x32xf32> to vector<8x32xf32>
    %74 = arith.addf %72, %73 : vector<8x32xf32>
    %75 = vector.extract_strided_slice %28 {offsets = [0, 0, 0], sizes = [4, 8, 8], strides = [1, 1, 1]} : vector<4x8x24xf32> to vector<4x8x8xf32>
    %76 = vector.extract_strided_slice %21 {offsets = [0, 0, 8], sizes = [4, 8, 8], strides = [1, 1, 1]} : vector<4x8x24xf32> to vector<4x8x8xf32>
    %77 = vector.extract_strided_slice %21 {offsets = [0, 0, 16], sizes = [4, 8, 8], strides = [1, 1, 1]} : vector<4x8x24xf32> to vector<4x8x8xf32>
    %c0_46 = arith.constant 0 : index
    %c0_47 = arith.constant 0 : index
    %c0_48 = arith.constant 0 : index
    %78 = vector.load %arg14[%c0_46, %c0_47, %c0_48] : memref<4x32x8xf32, #tpu.memory_space<vmem>>, vector<4x32x8xf32>
    %c0_49 = arith.constant 0 : index
    %c0_50 = arith.constant 0 : index
    %79 = vector.load %arg15[%c0_49, %c0_50] : memref<1x32xf32, #tpu.memory_space<vmem>>, vector<1x32xf32>
    "tpu.trace_start"() <{level = 10 : i32, message = "hqe,hke->hqk"}> : () -> ()
    %cst_51 = arith.constant dense<0.000000e+00> : vector<4x8x8xf32>
    %80 = tpu.matmul %75, %76, %cst_51 {dimension_numbers = #tpu.dot_dimension_numbers<[2], [2], [1], [1], [0, 0, 0, 1, 1, 1], [0], [0]>} : vector<4x8x8xf32>, vector<4x8x8xf32>, vector<4x8x8xf32> -> vector<4x8x8xf32>
    "tpu.trace_stop"() : () -> ()
    %cst_52 = arith.constant dense<0xFF800000> : vector<4x8xf32>
    %81 = vector.multi_reduction <maximumf>, %80, %cst_52 [2] : vector<4x8x8xf32> to vector<4x8xf32>
    %82 = vector.shape_cast %81 : vector<4x8xf32> to vector<4x8x1xf32>
    %83 = vector.broadcast %82 : vector<4x8x1xf32> to vector<4x8x8xf32>
    %84 = arith.subf %80, %83 : vector<4x8x8xf32>
    %85 = math.exp %84 : vector<4x8x8xf32>
    %cst_53 = arith.constant dense<0.000000e+00> : vector<4x8xf32>
    %86 = vector.multi_reduction <add>, %85, %cst_53 [2] : vector<4x8x8xf32> to vector<4x8xf32>
    %87 = vector.shape_cast %86 : vector<4x8xf32> to vector<4x8x1xf32>
    %88 = tpu.reciprocal %87 {approx = true} : vector<4x8x1xf32> -> vector<4x8x1xf32>
    %89 = vector.broadcast %88 : vector<4x8x1xf32> to vector<4x8x8xf32>
    %90 = arith.mulf %85, %89 : vector<4x8x8xf32>
    "tpu.trace_start"() <{level = 10 : i32, message = "hqk,hke->hqe"}> : () -> ()
    %cst_54 = arith.constant dense<0.000000e+00> : vector<4x8x8xf32>
    %91 = tpu.matmul %90, %77, %cst_54 {dimension_numbers = #tpu.dot_dimension_numbers<[2], [1], [1], [2], [0, 0, 0, 1, 1, 2], [0], [0]>} : vector<4x8x8xf32>, vector<4x8x8xf32>, vector<4x8x8xf32> -> vector<4x8x8xf32>
    "tpu.trace_stop"() : () -> ()
    "tpu.trace_start"() <{level = 10 : i32, message = "hqe,hje->hqj"}> : () -> ()
    %cst_55 = arith.constant dense<0.000000e+00> : vector<4x8x32xf32>
    %92 = tpu.matmul %91, %78, %cst_55 {dimension_numbers = #tpu.dot_dimension_numbers<[2], [2], [1], [1], [0, 0, 0, 1, 1, 1], [0], [0]>} : vector<4x8x8xf32>, vector<4x32x8xf32>, vector<4x8x32xf32> -> vector<4x8x32xf32>
    "tpu.trace_stop"() : () -> ()
    %cst_56 = arith.constant dense<0.000000e+00> : vector<8x32xf32>
    %93 = vector.multi_reduction <add>, %92, %cst_56 [0] : vector<4x8x32xf32> to vector<8x32xf32>
    %94 = vector.broadcast %79 : vector<1x32xf32> to vector<8x32xf32>
    %95 = arith.addf %93, %94 : vector<8x32xf32>
    %96 = arith.addf %14, %95 : vector<8x32xf32>
    %c0_57 = arith.constant 0 : index
    %c0_58 = arith.constant 0 : index
    %97 = vector.load %arg16[%c0_57, %c0_58] : memref<1x32xf32, #tpu.memory_space<vmem>>, vector<1x32xf32>
    %c0_59 = arith.constant 0 : index
    %c0_60 = arith.constant 0 : index
    %98 = vector.load %arg17[%c0_59, %c0_60] : memref<1x32xf32, #tpu.memory_space<vmem>>, vector<1x32xf32>
    %cst_61 = arith.constant dense<0.000000e+00> : vector<8xf32>
    %99 = vector.multi_reduction <add>, %96, %cst_61 [1] : vector<8x32xf32> to vector<8xf32>
    %100 = vector.shape_cast %99 : vector<8xf32> to vector<8x1xf32>
    %cst_62 = arith.constant 3.200000e+01 : f32
    %101 = vector.broadcast %cst_62 : f32 to vector<8x1xf32>
    %102 = arith.divf %100, %101 : vector<8x1xf32>
    %103 = vector.broadcast %102 : vector<8x1xf32> to vector<8x32xf32>
    %104 = arith.subf %96, %103 : vector<8x32xf32>
    %105 = arith.mulf %104, %104 : vector<8x32xf32>
    %cst_63 = arith.constant dense<0.000000e+00> : vector<8xf32>
    %106 = vector.multi_reduction <add>, %105, %cst_63 [1] : vector<8x32xf32> to vector<8xf32>
    %107 = vector.shape_cast %106 : vector<8xf32> to vector<8x1xf32>
    %cst_64 = arith.constant 3.200000e+01 : f32
    %108 = vector.broadcast %cst_64 : f32 to vector<8x1xf32>
    %109 = arith.divf %107, %108 : vector<8x1xf32>
    %110 = vector.broadcast %102 : vector<8x1xf32> to vector<8x32xf32>
    %111 = arith.subf %96, %110 : vector<8x32xf32>
    %cst_65 = arith.constant 9.99999974E-6 : f32
    %112 = vector.broadcast %cst_65 : f32 to vector<8x1xf32>
    %113 = arith.addf %109, %112 : vector<8x1xf32>
    %114 = math.rsqrt %113 : vector<8x1xf32>
    %115 = vector.broadcast %114 : vector<8x1xf32> to vector<8x32xf32>
    %116 = arith.mulf %111, %115 : vector<8x32xf32>
    %117 = vector.broadcast %97 : vector<1x32xf32> to vector<8x32xf32>
    %118 = arith.mulf %116, %117 : vector<8x32xf32>
    %119 = vector.broadcast %98 : vector<1x32xf32> to vector<8x32xf32>
    %120 = arith.addf %118, %119 : vector<8x32xf32>
    %121 = arith.addf %74, %120 : vector<8x32xf32>
    %cst_66 = arith.constant 5.000000e-01 : f32
    %122 = vector.broadcast %cst_66 : f32 to vector<8x32xf32>
    %123 = arith.mulf %121, %122 : vector<8x32xf32>
    %c0_67 = arith.constant 0 : index
    %c0_68 = arith.constant 0 : index
    %124 = vector.load %arg18[%c0_67, %c0_68] : memref<1x32xf32, #tpu.memory_space<vmem>>, vector<1x32xf32>
    %c0_69 = arith.constant 0 : index
    %c0_70 = arith.constant 0 : index
    %c0_71 = arith.constant 0 : index
    %125 = vector.load %arg19[%c0_69, %c0_70, %c0_71] : memref<1x9x32xf32, #tpu.memory_space<vmem>>, vector<1x1x32xf32>
    %126 = vector.shape_cast %125 : vector<1x1x32xf32> to vector<1x32xf32>
    %127 = vector.shape_cast %124 : vector<1x32xf32> to vector<1x1x32xf32>
    tpu.vector_store %arg19[%c0_69, %c0_70, %c0_71], %127 {strides = array<i32>} : memref<1x9x32xf32, #tpu.memory_space<vmem>>, vector<1x1x32xf32>,
    %c0_72 = arith.constant 0 : index
    %c1 = arith.constant 1 : index
    %c0_73 = arith.constant 0 : index
    %128 = vector.load %arg19[%c0_72, %c1, %c0_73] : memref<1x9x32xf32, #tpu.memory_space<vmem>>, vector<1x8x32xf32>
    %129 = vector.shape_cast %128 : vector<1x8x32xf32> to vector<8x32xf32>
    %130 = vector.shape_cast %123 : vector<8x32xf32> to vector<1x8x32xf32>
    tpu.vector_store %arg19[%c0_72, %c1, %c0_73], %130 {strides = array<i32>} : memref<1x9x32xf32, #tpu.memory_space<vmem>>, vector<1x8x32xf32>,
    return
  }
  func.func @transform_0(%arg0: i32) -> (i32, i32, i32) {
    %c0_i32 = arith.constant 0 : i32
    %c0_i32_0 = arith.constant 0 : i32
    %c0_i32_1 = arith.constant 0 : i32
    return %arg0, %c0_i32, %c0_i32_0 : i32, i32, i32
  }
  func.func @transform_1(%arg0: i32) -> (i32, i32, i32) {
    %c0_i32 = arith.constant 0 : i32
    %c0_i32_0 = arith.constant 0 : i32
    %c0_i32_1 = arith.constant 0 : i32
    return %arg0, %c0_i32, %c0_i32_0 : i32, i32, i32
  }
  func.func @transform_2(%arg0: i32) -> (i32, i32, i32) {
    %c0_i32 = arith.constant 0 : i32
    %c0_i32_0 = arith.constant 0 : i32
    %c0_i32_1 = arith.constant 0 : i32
    return %arg0, %c0_i32, %c0_i32_0 : i32, i32, i32
  }
  func.func @transform_3(%arg0: i32) -> (i32, i32) {
    %c0_i32 = arith.constant 0 : i32
    %c0_i32_0 = arith.constant 0 : i32
    %c0_i32_1 = arith.constant 0 : i32
    return %c0_i32, %c0_i32_0 : i32, i32
  }
  func.func @transform_4(%arg0: i32) -> (i32, i32) {
    %c0_i32 = arith.constant 0 : i32
    %c0_i32_0 = arith.constant 0 : i32
    %c0_i32_1 = arith.constant 0 : i32
    return %c0_i32, %c0_i32_0 : i32, i32
  }
  func.func @transform_5(%arg0: i32) -> (i32, i32, i32) {
    %c0_i32 = arith.constant 0 : i32
    %c0_i32_0 = arith.constant 0 : i32
    %c0_i32_1 = arith.constant 0 : i32
    %c0_i32_2 = arith.constant 0 : i32
    return %c0_i32, %c0_i32_0, %c0_i32_1 : i32, i32, i32
  }
  func.func @transform_6(%arg0: i32) -> (i32, i32, i32) {
    %c0_i32 = arith.constant 0 : i32
    %c0_i32_0 = arith.constant 0 : i32
    %c0_i32_1 = arith.constant 0 : i32
    %c0_i32_2 = arith.constant 0 : i32
    return %c0_i32, %c0_i32_0, %c0_i32_1 : i32, i32, i32
  }
  func.func @transform_7(%arg0: i32) -> (i32, i32, i32) {
    %c0_i32 = arith.constant 0 : i32
    %c0_i32_0 = arith.constant 0 : i32
    %c0_i32_1 = arith.constant 0 : i32
    %c0_i32_2 = arith.constant 0 : i32
    return %c0_i32, %c0_i32_0, %c0_i32_1 : i32, i32, i32
  }
  func.func @transform_8(%arg0: i32) -> (i32, i32, i32) {
    %c0_i32 = arith.constant 0 : i32
    %c0_i32_0 = arith.constant 0 : i32
    %c0_i32_1 = arith.constant 0 : i32
    %c0_i32_2 = arith.constant 0 : i32
    return %c0_i32, %c0_i32_0, %c0_i32_1 : i32, i32, i32
  }
  func.func @transform_9(%arg0: i32) -> (i32, i32, i32) {
    %c0_i32 = arith.constant 0 : i32
    %c0_i32_0 = arith.constant 0 : i32
    %c0_i32_1 = arith.constant 0 : i32
    %c0_i32_2 = arith.constant 0 : i32
    return %c0_i32, %c0_i32_0, %c0_i32_1 : i32, i32, i32
  }
  func.func @transform_10(%arg0: i32) -> (i32, i32) {
    %c0_i32 = arith.constant 0 : i32
    %c0_i32_0 = arith.constant 0 : i32
    %c0_i32_1 = arith.constant 0 : i32
    return %c0_i32, %c0_i32_0 : i32, i32
  }
  func.func @transform_11(%arg0: i32) -> (i32, i32) {
    %c0_i32 = arith.constant 0 : i32
    %c0_i32_0 = arith.constant 0 : i32
    %c0_i32_1 = arith.constant 0 : i32
    return %c0_i32, %c0_i32_0 : i32, i32
  }
  func.func @transform_12(%arg0: i32) -> (i32, i32) {
    %c0_i32 = arith.constant 0 : i32
    %c0_i32_0 = arith.constant 0 : i32
    %c0_i32_1 = arith.constant 0 : i32
    return %c0_i32, %c0_i32_0 : i32, i32
  }
  func.func @transform_13(%arg0: i32) -> (i32, i32, i32) {
    %c0_i32 = arith.constant 0 : i32
    %c0_i32_0 = arith.constant 0 : i32
    %c0_i32_1 = arith.constant 0 : i32
    %c0_i32_2 = arith.constant 0 : i32
    return %c0_i32, %c0_i32_0, %c0_i32_1 : i32, i32, i32
  }
  func.func @transform_14(%arg0: i32) -> (i32, i32) {
    %c0_i32 = arith.constant 0 : i32
    %c0_i32_0 = arith.constant 0 : i32
    %c0_i32_1 = arith.constant 0 : i32
    return %c0_i32, %c0_i32_0 : i32, i32
  }
  func.func @transform_15(%arg0: i32) -> (i32, i32) {
    %c0_i32 = arith.constant 0 : i32
    %c0_i32_0 = arith.constant 0 : i32
    %c0_i32_1 = arith.constant 0 : i32
    return %c0_i32, %c0_i32_0 : i32, i32
  }
  func.func @transform_16(%arg0: i32) -> (i32, i32) {
    %c0_i32 = arith.constant 0 : i32
    %c0_i32_0 = arith.constant 0 : i32
    %c0_i32_1 = arith.constant 0 : i32
    return %c0_i32, %c0_i32_0 : i32, i32
  }
  func.func @transform_17(%arg0: i32) -> (i32, i32) {
    %c0_i32 = arith.constant 0 : i32
    %c0_i32_0 = arith.constant 0 : i32
    %c0_i32_1 = arith.constant 0 : i32
    return %c0_i32, %c0_i32_0 : i32, i32
  }
  func.func @transform_18(%arg0: i32) -> (i32, i32, i32) {
    %c0_i32 = arith.constant 0 : i32
    %c0_i32_0 = arith.constant 0 : i32
    %c0_i32_1 = arith.constant 0 : i32
    return %arg0, %c0_i32, %c0_i32_0 : i32, i32, i32
  }
}

</mosaic_0001>

<bundles_post_ra>
// kernel: tpu_custom_call.1
= control target key start
LH: loop header
LB: loop body
LE: loop exit
PB: predicated region body
PF: predicated region fallthrough
CT: control target
= control target key end

     0   :  { %s2265_s27 = smov 0   ;;  %s2740_s0 = inlined_call_operand.vmem [shape: f32[2,8,32], index: 0, kind: input, shape index: {}]   ;;  %s2741_s1 = inlined_call_operand.vmem [shape: f32[2,8,32], index: 1, kind: input, shape index: {}]   ;;  %s2742_s2 = inlined_call_operand.vmem [shape: f32[2,8,32], index: 2, kind: input, shape index: {}]   ;;  %s2743_s3 = inlined_call_operand.vmem [shape: f32[32,64], index: 3, kind: input, shape index: {}]   ;;  %s2744_s4 = inlined_call_operand.vmem [shape: f32[1,64], index: 4, kind: input, shape index: {}]   ;;  %s2745_s5 = inlined_call_operand.vmem [shape: f32[4,24,32], index: 5, kind: input, shape index: {}]   ;;  %s2746_s6 = inlined_call_operand.vmem [shape: f32[4,1,24], index: 6, kind: input, shape index: {}]   ;;  %s2747_s7 = inlined_call_operand.vmem [shape: f32[4,24,32], index: 7, kind: input, shape index: {}]   ;;  %s2748_s8 = inlined_call_operand.vmem [shape: f32[4,1,24], index: 8, kind: input, shape index: {}]   ;;  %s2749_s9 = inlined_call_operand.vmem [shape: f32[4,32,8], index: 9, kind: input, shape index: {}]   ;;  %s2750_s10 = inlined_call_operand.vmem [shape: f32[1,32], index: 10, kind: input, shape index: {}]   ;;  %s2751_s11 = inlined_call_operand.vmem [shape: f32[1,32], index: 11, kind: input, shape index: {}]   ;;  %s2752_s12 = inlined_call_operand.vmem [shape: f32[1,32], index: 12, kind: input, shape index: {}]   ;;  %s2753_s13 = inlined_call_operand.vmem [shape: f32[4,32,8], index: 13, kind: input, shape index: {}]   ;;  %s2754_s14 = inlined_call_operand.vmem [shape: f32[1,32], index: 14, kind: input, shape index: {}]   ;;  %s2755_s15 = inlined_call_operand.vmem [shape: f32[1,32], index: 15, kind: input, shape index: {}]   ;;  %s2756_s16 = inlined_call_operand.vmem [shape: f32[1,32], index: 16, kind: input, shape index: {}]   ;;  %s2757_s17 = inlined_call_operand.vmem [shape: f32[1,32], index: 17, kind: input, shape index: {}]   ;;  %s2758_s18 = inlined_call_operand.vmem [shape: f32[2,9,32], index: 18, kind: output, shape index: {}]  }
   0x1   :  { %2759 = sst [smem:[#allocation2_spill]] %s2740_s0 }
   0x2   :  { %2760 = sst [smem:[#allocation3_spill]] %s2741_s1 }
   0x3   :  { %2761 = sst [smem:[#allocation4_spill]] %s2742_s2 }
   0x4 LB: > { %s1971_s28 = sadd.s32 4294967295, %s2163_s27   ;;  %p1975_p0 = scmp.ge.s32.totalorder %s2163_s27, 1  ;;  %s2163_s27 = sphi %s2265_s27, %s28_s27  }
   0x5   : > { %p529_p1 = scmp.lt.s32.totalorder %s2163_s27, 3 }
   0x7   : > { %p530_p2 = pnand %p1975_p0, %p529_p1 }
   0x8   : > { %p590_p3 = scmp.lt.s32.totalorder (!%p530_p2), %s1971_s28, 1  ;;  %s2762_s26 = sld [smem:[#allocation2_spill]] (!%p530_p2) }
   0x9   : > { %533 = sbr.rel (%p530_p2) target bundleno = 2459 (0x99b), region = 92  ;;  %s2763_s19 = sld [smem:[#allocation4_spill]] (!%p530_p2) }
   0xa   : > { %s2165_s21 = smov (!%p530_p2), 32   ;;  %s2764_s24 = sld [smem:[#allocation3_spill]] (!%p530_p2) }
   0xb   : > { %s2166_s30 = smov (!%p530_p2), 96  }
   0xe   : > { %v611_v0 = vld [vmem:[%s2743_s3 + $0x18] sm:$0xff]  ;;  %v610_v1 = vld [vmem:[%s2743_s3 + $0x10] sm:$0xff]  ;;  %vm616_vm0 = vcmask 261120   ;;  %v653_v3 = vld [vmem:[%s2745_s5 + $0x28] sm:$0xff]  ;;  %s2766_s28 = smov (!%p590_p3, %s1971_s28), 1  ;;  %vm964_vm1 = vcmask 64512  }
   0xf   : > { %632 = vmatpush.msra.mxu0 %v611_v0  ;;  %v650_v2 = vld [vmem:[%s2745_s5 + $0x10] sm:$0xff]  ;;  %v609_v4 = vld [vmem:[%s2743_s3 + $0x8] sm:$0xff]  ;;  %1986 = vmatpush.xpose.msk.msra.mxu2 %vm616_vm0, %v653_v3  ;;  %v656_v5 = vld [vmem:[%s2745_s5 + $0x40] sm:$0xff]  ;;  %s2306_s20 = sshll.u32 %s2766_s28, 3  ;;  %s2080_s2 = sshll.u32 %s2766_s28, 4  ;;  %vm1889_vm3 = vcmask 253952  }
  0x10   : > { %1982 = vmatpush.xpose.msk.msra.mxu1 %vm616_vm0, %v650_v2  ;;  %v608_v6 = vld [vmem:[%s2743_s3] sm:$0xff]  ;;  %1990 = vmatpush.xpose.msk.msra.mxu3 %vm616_vm0, %v656_v5  ;;  %v649_v7 = vld [vmem:[%s2745_s5 + $0x8] sm:$0xff]  ;;  %v659_v9 = vld [vmem:[%s2745_s5 + $0x58] sm:$0xff]  ;;  %s593_s29 = scalar_lea.vmem %s2762_s26, %s2306_s20  ;;  %s601_s1 = scalar_lea.vmem %s2763_s19, %s2306_s20 }
  0x11   : > { %633 = vmatpush.msra.mxu0 %v610_v1  ;;  %v652_v8 = vld [vmem:[%s2745_s5 + $0x20] sm:$0xff]  ;;  %v655_v10 = vld [vmem:[%s2745_s5 + $0x38] sm:$0xff]  ;;  %v658_v13 = vld [vmem:[%s2745_s5 + $0x50] sm:$0xff]  ;;  %s597_s25 = scalar_lea.vmem %s2764_s24, %s2306_s20  ;;  %s2167_s19 = smov 120  }
  0x12   : > { %v607_v11 = vld [vmem:[%s593_s29] sm:$0xff]  ;;  %v651_v15 = vld [vmem:[%s2745_s5 + $0x18] sm:$0xff]  ;;  %v654_v16 = vld [vmem:[%s2745_s5 + $0x30] sm:$0xff]  ;;  %s2168_s24 = smov 112   ;;  %s2722_s26 = scalar_lea.vmem %s2758_s18, %s2080_s2 }
  0x13   : > { %634 = vmatpush.msra.mxu0 %v609_v4  ;;  %v642_v12 = vld [vmem:[%s601_s1] sm:$0xff]  ;;  %1987 = vmatpush.xpose.msk.msra.mxu2 %vm616_vm0, %v652_v8  ;;  %v657_v17 = vld [vmem:[%s2745_s5 + $0x48] sm:$0xff]  ;;  %v797_v18 = vld [vmem:[%s2747_s7 + $0x10] sm:$0xff] }
  0x14   : > { %1983 = vmatpush.xpose.msk.msra.mxu1 %vm616_vm0, %v649_v7  ;;  %644 = vrot.lane.b32.xlu0 %v642_v12, %s2165_s21  ;;  %v648_v14 = vld [vmem:[%s2745_s5] sm:$0xff]  ;;  %v800_v19 = vld [vmem:[%s2747_s7 + $0x28] sm:$0xff]  ;;  %v806_v21 = vld [vmem:[%s2747_s7 + $0x58] sm:$0xff] }
  0x15   : > { %635 = vmatpush.msra.mxu0 %v608_v6  ;;  %1991 = vmatpush.xpose.msk.msra.mxu3 %vm616_vm0, %v655_v10  ;;  %v803_v20 = vld [vmem:[%s2747_s7 + $0x40] sm:$0xff]  ;;  %v796_v22 = vld [vmem:[%s2747_s7 + $0x8] sm:$0xff]  ;;  %v802_v24 = vld [vmem:[%s2747_s7 + $0x38] sm:$0xff] }
  0x16   : > { %1981 = vmatmul.msk.f32.vlgmr.msra.gmra.mxu0 %vm616_vm0, %v607_v11  ;;  %v799_v23 = vld [vmem:[%s2747_s7 + $0x20] sm:$0xff]  ;;  %v805_v25 = vld [vmem:[%s2747_s7 + $0x50] sm:$0xff]  ;;  %v798_v27 = vld [vmem:[%s2747_s7 + $0x18] sm:$0xff] }
  0x17   : > { %1994 = vmatpush.xpose.msk.msrb.mxu0 %vm616_vm0, %v659_v9  ;;  %1988 = vmatpush.xpose.msk.msra.mxu2 %vm616_vm0, %v651_v15  ;;  %v795_v26 = vld [vmem:[%s2747_s7] sm:$0xff]  ;;  %v801_v28 = vld [vmem:[%s2747_s7 + $0x30] sm:$0xff]  ;;  %v804_v29 = vld [vmem:[%s2747_s7 + $0x48] sm:$0xff] }
  0x18   : > { %1984 = vmatpush.xpose.msk.msra.mxu1 %vm616_vm0, %v648_v14  ;;  %v2104_v30 = vld [vmem:[%s2744_s4] ss:$0 sm:$0xff]  ;;  %v2111_v44 = vld [vmem:[%s2748_s8 + $0x1] ss:$0 sm:$0xff]  ;;  %v2110_v46 = vld [vmem:[%s2748_s8 + $0x3] ss:$0 sm:$0xff] }
  0x19   : > { %1992 = vmatpush.xpose.msk.msra.mxu3 %vm616_vm0, %v654_v16  ;;  %v640_v32 = vld [vmem:[%s597_s25] sm:$0xff] }
  0x1a   : > { %v2109_v39 = vld [vmem:[%s2748_s8] ss:$0 sm:$0xff]  ;;  %v2112_v51 = vld [vmem:[%s2748_s8 + $0x2] ss:$0 sm:$0xff]  ;;  %v2106_v57 = vld [vmem:[%s2746_s6 + $0x3] ss:$0 sm:$0xff] }
  0x1b   : > { %1995 = vmatpush.xpose.msk.msrb.mxu0 %vm616_vm0, %v658_v13  ;;  %2002 = vmatpush.xpose.msk.msrb.mxu2 %vm616_vm0, %v800_v19  ;;  %v2105_v54 = vld [vmem:[%s2746_s6] ss:$0 sm:$0xff]  ;;  %v2107_v60 = vld [vmem:[%s2746_s6 + $0x1] ss:$0 sm:$0xff]  ;;  %v2108_v63 = vld [vmem:[%s2746_s6 + $0x2] ss:$0 sm:$0xff] }
  0x1c   : > { %1998 = vmatpush.xpose.msk.msrb.mxu1 %vm616_vm0, %v797_v18 }
  0x1d   : > { %2006 = vmatpush.xpose.msk.msrb.mxu3 %vm616_vm0, %v803_v20 }
  0x1f   : > { %1996 = vmatpush.xpose.msk.msrb.mxu0 %vm616_vm0, %v657_v17  ;;  %2003 = vmatpush.xpose.msk.msrb.mxu2 %vm616_vm0, %v799_v23 }
  0x20   : > { %1999 = vmatpush.xpose.msk.msrb.mxu1 %vm616_vm0, %v796_v22 }
  0x21   : > { %2007 = vmatpush.xpose.msk.msrb.mxu3 %vm616_vm0, %v802_v24 }
  0x23   : > { %2010 = vmatpush.xpose.msk.msra.mxu0 %vm616_vm0, %v806_v21  ;;  %2004 = vmatpush.xpose.msk.msrb.mxu2 %vm616_vm0, %v798_v27 }
  0x24   : > { %2000 = vmatpush.xpose.msk.msrb.mxu1 %vm616_vm0, %v795_v26 }
  0x25   : > { %2008 = vmatpush.xpose.msk.msrb.mxu3 %vm616_vm0, %v801_v28 }
  0x27   : > { %2011 = vmatpush.xpose.msk.msra.mxu0 %vm616_vm0, %v805_v25 }
  0x2b   : > { %2012 = vmatpush.xpose.msk.msra.mxu0 %vm616_vm0, %v804_v29 }
  0x86   : > { %v645_v33 = vpop.permute.xlu0 %644 }
  0x93   : > { %v637_v31 = vpop.f32.mrf.mxu0 }
  0x94   : > { %v638_v34 = vadd.f32 %v2104_v30, %v637_v31 }
  0x96   : > { %v2403_v35 = vadd.f32 %v640_v32, %v638_v34  ;;  %v2405_v36 = vadd.f32 %v645_v33, %v638_v34  ;;  %v951_v34 = vld [vmem:[%s2749_s9 + $0x38] sm:$0xff] }
  0x98   : > { %824 = vrot.lane.b32.xlu0 %v2405_v36, %s2166_s30  ;;  %1985 = vmatmul.msk.f32.vlgmr.msra.gmra.mxu1 %vm616_vm0, %v2403_v35 }
  0x99   : > { %1989 = vmatmul.msk.f32.vlgmr.msra.gmra.mxu2 %vm616_vm0, %v2403_v35  ;;  %1993 = vmatmul.msk.f32.vlgmr.msra.gmra.mxu3 %vm616_vm0, %v2403_v35 }
  0x9a   : > { %1997 = vmatmul.msk.f32.vlgmr.msrb.gmra.mxu0 %vm616_vm0, %v2403_v35 }
 0x10a   : > { %v825_v37 = vpop.permute.xlu0 %824 }
 0x10b   : > { %2001 = vmatmul.msk.f32.vlgmr.msrb.gmra.mxu1 %vm616_vm0, %v825_v37  ;;  %2005 = vmatmul.msk.f32.vlgmr.msrb.gmra.mxu2 %vm616_vm0, %v825_v37 }
 0x10c   : > { %2009 = vmatmul.msk.f32.vlgmr.msrb.gmra.mxu3 %vm616_vm0, %v825_v37  ;;  %2013 = vmatmul.msk.f32.vlgmr.msra.gmra.mxu0 %vm616_vm0, %v825_v37  ;;  %v950_v37 = vld [vmem:[%s2749_s9 + $0x30] sm:$0xff] }
 0x115   : > { %v705_v38 = vpop.f32.mrf.mxu1 }
 0x116   : > { %v2453_v56 = vadd.f32 %v2105_v54, %v705_v38  ;;  %v949_v38 = vld [vmem:[%s2749_s9 + $0x28] sm:$0xff] }
 0x117   : > { %v792_v40 = vpop.f32.mrf.mxu0 }
 0x118   : > { %v2461_v59 = vadd.f32 %v2106_v57, %v792_v40  ;;  %v955_v40 = vld [vmem:[%s2749_s9 + $0x58] sm:$0xff] }
 0x11c   : > { %v734_v41 = vpop.f32.mrf.mxu2  ;;  %v763_v45 = vpop.f32.mrf.mxu3 }
 0x11d   : > { %v2469_v62 = vadd.f32 %v2107_v60, %v734_v41  ;;  %v2477_v1 = vadd.f32 %v2108_v63, %v763_v45  ;;  %v954_v41 = vld [vmem:[%s2749_s9 + $0x50] sm:$0xff]  ;;  %v952_v45 = vld [vmem:[%s2749_s9 + $0x40] sm:$0xff]  ;;  %v947_v63 = vld [vmem:[%s2749_s9 + $0x18] sm:$0xff] }
 0x188   : > { %v854_v42 = vpop.f32.mrf.mxu1 }
 0x189   : > { %v2424_v43 = vadd.f32 %v2109_v39, %v854_v42  ;;  %v941_v47 = vpop.f32.mrf.mxu0  ;;  %v948_v39 = vld [vmem:[%s2749_s9 + $0x20] sm:$0xff]  ;;  %v953_v42 = vld [vmem:[%s2749_s9 + $0x48] sm:$0xff] }
 0x18a   : > { %v2436_v50 = vadd.f32 %v2110_v46, %v941_v47 }
 0x18b   : > { %962 = vrot.lane.b32.xlu2 %v2424_v43, %s2167_s19 }
 0x18e   : > { %v883_v48 = vpop.f32.mrf.mxu2 }
 0x18f   : > { %v2434_v49 = vadd.f32 %v2111_v44, %v883_v48  ;;  %v912_v52 = vpop.f32.mrf.mxu3 }
 0x190   : > { %v2445_v53 = vadd.f32 %v2112_v51, %v912_v52 }
 0x191   : > { %991 = vrot.lane.b32.xlu1 %v2434_v49, %s2167_s19 }
 0x192   : > { %v2094_v6 = vpack.i.bf16 %v2445_v53, %v2434_v49 }
 0x193   : > { %1047 = vrot.lane.b32.xlu2 %v2436_v50, %s2167_s19 }
 0x199   : > { %1019 = vrot.lane.b32.xlu1 %v2445_v53, %s2167_s19 }
 0x1e5   : > { %v963_v55 = vpop.permute.xlu2 %962 }
 0x1e6   : > { %2014 = vmatpush.xpose.msk.msra.mxu1 %vm964_vm1, %v963_v55 }
 0x1e9   : > { %2015 = vmatmul.msk.f32.vlgmr.msra.gmra.mxu1 %vm964_vm1, %v2453_v56 }
 0x1ed   : > { %v1048_v58 = vpop.permute.xlu2 %1047 }
 0x1ee   : > { %2020 = vmatpush.xpose.msk.msrb.mxu0 %vm964_vm1, %v1048_v58 }
 0x1f1   : > { %2021 = vmatmul.msk.f32.vlgmr.msrb.gmra.mxu0 %vm964_vm1, %v2461_v59 }
 0x203   : > { %v992_v61 = vpop.permute.xlu1 %991 }
 0x204   : > { %2016 = vmatpush.xpose.msk.msra.mxu2 %vm964_vm1, %v992_v61 }
 0x207   : > { %2017 = vmatmul.msk.f32.vlgmr.msra.gmra.mxu2 %vm964_vm1, %v2469_v62 }
 0x20b   : > { %v1020_v0 = vpop.permute.xlu1 %1019 }
 0x20c   : > { %2018 = vmatpush.xpose.msk.msra.mxu3 %vm964_vm1, %v1020_v0  ;;  %v946_v0 = vld [vmem:[%s2749_s9 + $0x10] sm:$0xff] }
 0x20f   : > { %2019 = vmatmul.msk.f32.vlgmr.msra.gmra.mxu3 %vm964_vm1, %v2477_v1 }
 0x266   : > { %v987_v2 = vpop.f32.mrf.mxu1 }
 0x267   : > { %v1074_v3 = vsel %vm964_vm1, %v987_v2, -inf }
 0x268   : > { %1075 = vmax.xlane.f32.xlu2 %v1074_v3  ;;  %v945_v3 = vld [vmem:[%s2749_s9 + $0x8] sm:$0xff] }
 0x26e   : > { %v1071_v4 = vpop.f32.mrf.mxu0 }
 0x26f   : > { %v1083_v5 = vsel %vm964_vm1, %v1071_v4, -inf }
 0x270   : > { %1084 = vmax.xlane.f32.xlu2 %v1083_v5  ;;  %v944_v5 = vld [vmem:[%s2749_s9] sm:$0xff] }
 0x288   : > { %2095 = vrot.lane.b32.xlu2 %v2094_v6, %s2168_s24 }
 0x28a   : > { %v1015_v7 = vpop.f32.mrf.mxu2 }
 0x28b   : > { %v1077_v8 = vsel %vm964_vm1, %v1015_v7, -inf }
 0x28c   : > { %1078 = vmax.xlane.f32.xlu0 %v1077_v8  ;;  %v959_v8 = vld [vmem:[%s2749_s9 + $0x78] sm:$0xff] }
 0x290   : > { %1456 = vrot.lane.b32.xlu2 %v2469_v62, %s2167_s19 }
 0x292   : > { %v1043_v9 = vpop.f32.mrf.mxu3 }
 0x293   : > { %v1080_v10 = vsel %vm964_vm1, %v1043_v9, -inf }
 0x294   : > { %1081 = vmax.xlane.f32.xlu1 %v1080_v10  ;;  %v958_v10 = vld [vmem:[%s2749_s9 + $0x70] sm:$0xff] }
 0x298   : > { %1430 = vrot.lane.b32.xlu2 %v2453_v56, %s2167_s19 }
 0x2db   : > { %v1076_v11 = vpop.xlane.xlu2 %1075 }
 0x2dc   : > { %v1086_v12 = vsub.f32 %v987_v2, %v1076_v11  ;;  %v957_v11 = vld [vmem:[%s2749_s9 + $0x68] sm:$0xff] }
 0x2de   : > { %v1090_v13 = vmul.f32 1.442695, %v1086_v12  ;;  %v956_v12 = vld [vmem:[%s2749_s9 + $0x60] sm:$0xff] }
 0x2e0   : > { %2119 = vpow2.f32 %v1090_v13 }
 0x2e3   : > { %v1085_v14 = vpop.xlane.xlu2 %1084 }
 0x2e4   : > { %v1089_v15 = vsub.f32 %v1071_v4, %v1085_v14 }
 0x2e6   : > { %v2492_v16 = vpop.eup %2119  ;;  %v1096_v17 = vmul.f32 1.442695, %v1089_v15 }
 0x2e7   : > { %v1098_v18 = vsel %vm964_vm1, %v2492_v16, 0.0 }
 0x2e8   : > { %2121 = vpow2.f32 %v1096_v17  ;;  %1099 = vadd.xlane.f32.xlu0 %v1098_v18 }
 0x2eb   : > { %v2096_v19 = vpop.permute.xlu2 %2095 }
 0x2ec   : > { %v2098_v20 = vunpack.i.h.bf16 %v2096_v19  ;;  %v2097_v21 = vunpack.i.l.bf16 %v2096_v19 }
 0x2ee   : > { %v2496_v22 = vpop.eup %2121  ;;  %1165 = vmatpush.msrb.mxu2 %v2097_v21  ;;  %1191 = vmatpush.msrb.mxu3 %v2098_v20 }
 0x2ef   : > { %v1107_v23 = vsel %vm964_vm1, %v2496_v22, 0.0 }
 0x2f0   : > { %1108 = vadd.xlane.f32.xlu1 %v1107_v23  ;;  %2031 = vmatpush.xpose.msk.msra.mxu2 %vm964_vm1, %v951_v34 }
 0x2f1   : > { %2036 = vmatpush.xpose.msk.msra.mxu3 %vm964_vm1, %v955_v40 }
 0x2f3   : > { %v1457_v54 = vpop.permute.xlu2 %1456 }
 0x2f4   : > { %2032 = vmatpush.xpose.msk.msra.mxu2 %vm964_vm1, %v950_v37 }
 0x2f5   : > { %2037 = vmatpush.xpose.msk.msra.mxu3 %vm964_vm1, %v954_v41 }
 0x2f8   : > { %2033 = vmatpush.xpose.msk.msra.mxu2 %vm964_vm1, %v949_v38 }
 0x2f9   : > { %2038 = vmatpush.xpose.msk.msra.mxu3 %vm964_vm1, %v953_v42 }
 0x2fc   : > { %2034 = vmatpush.xpose.msk.msra.mxu2 %vm964_vm1, %v948_v39 }
 0x2fd   : > { %2039 = vmatpush.xpose.msk.msra.mxu3 %vm964_vm1, %v952_v45 }
 0x2ff   : > { %v1079_v24 = vpop.xlane.xlu0 %1078 }
 0x300   : > { %v1087_v25 = vsub.f32 %v1015_v7, %v1079_v24 }
 0x302   : > { %v1092_v26 = vmul.f32 1.442695, %v1087_v25 }
 0x304   : > { %2123 = vpow2.f32 %v1092_v26 }
 0x307   : > { %v1082_v27 = vpop.xlane.xlu1 %1081 }
 0x308   : > { %v1088_v28 = vsub.f32 %v1043_v9, %v1082_v27  ;;  %v1431_v9 = vpop.permute.xlu2 %1430 }
 0x30a   : > { %v2124_v29 = vpop.eup %2123  ;;  %v1094_v30 = vmul.f32 1.442695, %v1088_v28 }
 0x30b   : > { %v1101_v31 = vsel %vm964_vm1, %v2124_v29, 0.0 }
 0x30c   : > { %2125 = vpow2.f32 %v1094_v30  ;;  %1102 = vadd.xlane.f32.xlu0 %v1101_v31 }
 0x312   : > { %v2126_v32 = vpop.eup %2125 }
 0x313   : > { %v1104_v33 = vsel %vm964_vm1, %v2126_v32, 0.0 }
 0x314   : > { %1105 = vadd.xlane.f32.xlu1 %v1104_v33  ;;  %v2099_v33 = vpack.i.bf16 %v2477_v1, %v2469_v62 }
 0x320   : > { %1118 = vrot.lane.b32.xlu0 %v2424_v43, %s2168_s24 }
 0x328   : > { %1482 = vrot.lane.b32.xlu0 %v2477_v1, %s2167_s19 }
 0x32d   : > { %1196 = vrot.lane.b32.xlu1 %v2436_v50, %s2168_s24 }
 0x335   : > { %1508 = vrot.lane.b32.xlu1 %v2461_v59, %s2167_s19 }
 0x35b   : > { %v1100_v44 = vpop.xlane.xlu0 %1099 }
 0x363   : > { %v1109_v46 = vpop.xlane.xlu1 %1108 }
 0x37f   : > { %v1103_v47 = vpop.xlane.xlu0 %1102 }
 0x380   : > { %2127 = vrcp.f32 %v1103_v47 }
 0x386   : > { %v2128_v48 = vpop.eup %2127 }
 0x387   : > { %v1115_v51 = vmul.f32 %v2128_v48, %v2124_v29  ;;  %v1106_v52 = vpop.xlane.xlu1 %1105 }
 0x388   : > { %2129 = vrcp.f32 %v1106_v52 }
 0x389   : > { %2131 = vrcp.f32 %v1100_v44  ;;  %2023 = vmatmul.msk.f32.vlgmr.msrb.gmra.mxu2 %vm964_vm1, %v1115_v51 }
 0x38a   : > { %2048 = vmatpush.xpose.msk.msrb.mxu2 %vm964_vm1, %v1457_v54  ;;  %2133 = vrcp.f32 %v1109_v46 }
 0x38e   : > { %v2130_v55 = vpop.eup %2129 }
 0x38f   : > { %v2132_v57 = vpop.eup %2131  ;;  %v1116_v58 = vmul.f32 %v2130_v55, %v2126_v32 }
 0x390   : > { %v1114_v60 = vmul.f32 %v2132_v57, %v2492_v16  ;;  %v2134_v4 = vpop.eup %2133 }
 0x391   : > { %2024 = vmatmul.msk.f32.vlgmr.msrb.gmra.mxu3 %vm964_vm1, %v1116_v58  ;;  %v1117_v6 = vmul.f32 %v2134_v4, %v2496_v22 }
 0x392   : > { %v1119_v61 = vpop.permute.xlu0 %1118 }
 0x393   : > { %1139 = vmatpush.msrb.mxu1 %v1119_v61 }
 0x394   : > { %2022 = vmatmul.msk.f32.vlgmr.msrb.gmra.mxu1 %vm964_vm1, %v1114_v60 }
 0x395   : > { %2026 = vmatpush.xpose.msk.msra.mxu1 %vm964_vm1, %v947_v63 }
 0x399   : > { %2027 = vmatpush.xpose.msk.msra.mxu1 %vm964_vm1, %v946_v0  ;;  %v2113_v0 = vld [vmem:[%s2750_s10] ss:$0 sm:$0xff] }
 0x39a   : > { %v1483_v2 = vpop.permute.xlu0 %1482 }
 0x39b   : > { %2050 = vmatpush.xpose.msk.msrb.mxu3 %vm964_vm1, %v1483_v2 }
 0x39d   : > { %2028 = vmatpush.xpose.msk.msra.mxu1 %vm964_vm1, %v945_v3 }
 0x39f   : > { %v1197_v7 = vpop.permute.xlu1 %1196 }
 0x3a0   : > { %1217 = vmatpush.msra.mxu0 %v1197_v7 }
 0x3a1   : > { %2029 = vmatpush.xpose.msk.msra.mxu1 %vm964_vm1, %v944_v5  ;;  %2025 = vmatmul.msk.f32.vlgmr.msra.gmra.mxu0 %vm964_vm1, %v1117_v6 }
 0x3a2   : > { %2041 = vmatpush.xpose.msk.msrb.mxu0 %vm964_vm1, %v959_v8 }
 0x3a5   : > { %2046 = vmatpush.xpose.msk.msrb.mxu1 %vm964_vm1, %v1431_v9 }
 0x3a6   : > { %2042 = vmatpush.xpose.msk.msrb.mxu0 %vm964_vm1, %v958_v10 }
 0x3a7   : > { %v1509_v13 = vpop.permute.xlu1 %1508 }
 0x3aa   : > { %2043 = vmatpush.xpose.msk.msrb.mxu0 %vm964_vm1, %v957_v11 }
 0x3ae   : > { %2044 = vmatpush.xpose.msk.msrb.mxu0 %vm964_vm1, %v956_v12 }
 0x3b2   : > { %2052 = vmatpush.xpose.msk.msra.mxu0 %vm964_vm1, %v1509_v13 }
 0x40c   : > { %v1167_v14 = vpop.f32.mrf.mxu2 }
 0x40d   : > { %2035 = vmatmul.msk.f32.vlgmr.msra.gmra.mxu2 %vm964_vm1, %v1167_v14 }
 0x411   : > { %v1141_v15 = vpop.f32.mrf.mxu1 }
 0x412   : > { %2030 = vmatmul.msk.f32.vlgmr.msra.gmra.mxu1 %vm964_vm1, %v1141_v15 }
 0x414   : > { %v1193_v16 = vpop.f32.mrf.mxu3 }
 0x415   : > { %2040 = vmatmul.msk.f32.vlgmr.msra.gmra.mxu3 %vm964_vm1, %v1193_v16  ;;  %2049 = vmatmul.msk.f32.vlgmr.msrb.gmra.mxu2 %vm964_vm1, %v2434_v49  ;;  %v1416_v16 = vld [vmem:[%s2753_s13 + $0x18] sm:$0xff] }
 0x41a   : > { %2047 = vmatmul.msk.f32.vlgmr.msrb.gmra.mxu1 %vm964_vm1, %v2424_v43 }
 0x41d   : > { %2051 = vmatmul.msk.f32.vlgmr.msrb.gmra.mxu3 %vm964_vm1, %v2445_v53 }
 0x41e   : > { %v1219_v17 = vpop.f32.mrf.mxu0 }
 0x41f   : > { %2045 = vmatmul.msk.f32.vlgmr.msrb.gmra.mxu0 %vm964_vm1, %v1219_v17  ;;  %v1420_v17 = vld [vmem:[%s2753_s13 + $0x38] sm:$0xff] }
 0x427   : > { %2053 = vmatmul.msk.f32.vlgmr.msra.gmra.mxu0 %vm964_vm1, %v2436_v50 }
 0x48f   : > { %v1254_v18 = vpop.f32.mrf.mxu1 }
 0x490   : > { %v1362_v19 = vsel %vm616_vm0, %v1254_v18, 0.0  ;;  %v1289_v20 = vpop.f32.mrf.mxu2  ;;  %v1415_v18 = vld [vmem:[%s2753_s13 + $0x10] sm:$0xff] }
 0x491   : > { %v1363_v21 = vsel %vm616_vm0, %v1289_v20, 0.0  ;;  %v1414_v20 = vld [vmem:[%s2753_s13 + $0x8] sm:$0xff] }
 0x492   : > { %v1364_v22 = vadd.f32 %v1363_v21, %v1362_v19  ;;  %v1419_v19 = vld [vmem:[%s2753_s13 + $0x30] sm:$0xff]  ;;  %v1413_v21 = vld [vmem:[%s2753_s13] sm:$0xff] }
 0x497   : > { %v1453_v49 = vpop.f32.mrf.mxu1 }
 0x498   : > { %v1324_v23 = vpop.f32.mrf.mxu3  ;;  %v1479_v24 = vpop.f32.mrf.mxu2  ;;  %v1534_v43 = vsel %vm964_vm1, %v1453_v49, -inf }
 0x499   : > { %v1365_v53 = vsel %vm616_vm0, %v1324_v23, 0.0  ;;  %1535 = vmax.xlane.f32.xlu1 %v1534_v43  ;;  %v1537_v25 = vsel %vm964_vm1, %v1479_v24, -inf  ;;  %v1417_v23 = vld [vmem:[%s2753_s13 + $0x20] sm:$0xff]  ;;  %v1428_v43 = vld [vmem:[%s2753_s13 + $0x78] sm:$0xff] }
 0x49a   : > { %v1366_v26 = vadd.f32 %v1365_v53, %v1364_v22  ;;  %1538 = vmax.xlane.f32.xlu0 %v1537_v25  ;;  %v1418_v22 = vld [vmem:[%s2753_s13 + $0x28] sm:$0xff]  ;;  %v1421_v25 = vld [vmem:[%s2753_s13 + $0x40] sm:$0xff] }
 0x49b   : > { %v1422_v53 = vld [vmem:[%s2753_s13 + $0x48] sm:$0xff] }
 0x49c   : > { %v1359_v50 = vpop.f32.mrf.mxu0 }
 0x49d   : > { %v1367_v27 = vsel %vm616_vm0, %v1359_v50, 0.0  ;;  %v1426_v50 = vld [vmem:[%s2753_s13 + $0x68] sm:$0xff] }
 0x49e   : > { %v1368_v28 = vadd.f32 %v1367_v27, %v1366_v26  ;;  %v1427_v26 = vld [vmem:[%s2753_s13 + $0x70] sm:$0xff]  ;;  %v1425_v27 = vld [vmem:[%s2753_s13 + $0x60] sm:$0xff] }
 0x4a0   : > { %v1505_v29 = vpop.f32.mrf.mxu3  ;;  %v1372_v2 = vadd.f32 %v2113_v0, %v1368_v28 }
 0x4a1   : > { %v1540_v30 = vsel %vm964_vm1, %v1505_v29, -inf }
 0x4a2   : > { %1541 = vmax.xlane.f32.xlu2 %v1540_v30  ;;  %v2619_v3 = vadd.f32 %v1372_v2, %v2403_v35 }
 0x4a4   : > { %v1531_v31 = vpop.f32.mrf.mxu0  ;;  %v1376_v4 = vsel %vm616_vm0, %v2619_v3, 0.0 }
 0x4a5   : > { %v1543_v32 = vsel %vm964_vm1, %v1531_v31, -inf }
 0x4a6   : > { %1544 = vmax.xlane.f32.xlu0 %v1543_v32 }
 0x4ba   : > { %2100 = vrot.lane.b32.xlu0 %v2099_v33, %s2168_s24 }
 0x50c   : > { %v1536_v34 = vpop.xlane.xlu1 %1535 }
 0x50d   : > { %v1546_v37 = vsub.f32 %v1453_v49, %v1536_v34  ;;  %v1539_v38 = vpop.xlane.xlu0 %1538  ;;  %v1424_v49 = vld [vmem:[%s2753_s13 + $0x58] sm:$0xff] }
 0x50e   : > { %v1547_v40 = vsub.f32 %v1479_v24, %v1539_v38  ;;  %v1423_v24 = vld [vmem:[%s2753_s13 + $0x50] sm:$0xff] }
 0x50f   : > { %v1550_v39 = vmul.f32 1.442695, %v1546_v37 }
 0x510   : > { %v1552_v41 = vmul.f32 1.442695, %v1547_v40 }
 0x511   : > { %2135 = vpow2.f32 %v1550_v39 }
 0x512   : > { %2137 = vpow2.f32 %v1552_v41 }
 0x515   : > { %v1542_v45 = vpop.xlane.xlu2 %1541 }
 0x516   : > { %v1548_v48 = vsub.f32 %v1505_v29, %v1542_v45 }
 0x517   : > { %v2136_v42 = vpop.eup %2135 }
 0x518   : > { %v1558_v44 = vsel %vm964_vm1, %v2136_v42, 0.0  ;;  %v2138_v62 = vpop.eup %2137  ;;  %v1554_v1 = vmul.f32 1.442695, %v1548_v48 }
 0x519   : > { %1559 = vadd.xlane.f32.xlu2 %v1558_v44  ;;  %v1545_v46 = vpop.xlane.xlu0 %1544  ;;  %v1561_v52 = vsel %vm964_vm1, %v2138_v62, 0.0  ;;  %v2114_v44 = vld [vmem:[%s2754_s14] ss:$0 sm:$0xff] }
 0x51a   : > { %v1549_v47 = vsub.f32 %v1531_v31, %v1545_v46 }
 0x51c   : > { %v1556_v51 = vmul.f32 1.442695, %v1549_v47 }
 0x51e   : > { %2139 = vpow2.f32 %v1556_v51 }
 0x51f   : > { %2141 = vpow2.f32 %v1554_v1 }
 0x521   : > { %1562 = vadd.xlane.f32.xlu2 %v1561_v52  ;;  %v2169_v52 = vmov 32.0  }
 0x524   : > { %v2140_v54 = vpop.eup %2139 }
 0x525   : > { %v1567_v55 = vsel %vm964_vm1, %v2140_v54, 0.0  ;;  %v2142_v57 = vpop.eup %2141 }
 0x526   : > { %1568 = vadd.xlane.f32.xlu1 %v1567_v55  ;;  %v1564_v63 = vsel %vm964_vm1, %v2142_v57, 0.0 }
 0x52c   : > { %v2101_v58 = vpop.permute.xlu0 %2100 }
 0x52d   : > { %v2103_v60 = vunpack.i.h.bf16 %v2101_v58  ;;  %v2102_v61 = vunpack.i.l.bf16 %v2101_v58 }
 0x52e   : > { %1565 = vadd.xlane.f32.xlu1 %v1564_v63 }
 0x52f   : > { %1625 = vmatpush.msra.mxu2 %v2102_v61  ;;  %1651 = vmatpush.msra.mxu3 %v2103_v60 }
 0x531   : > { %2063 = vmatpush.xpose.msk.msrb.mxu2 %vm964_vm1, %v1420_v17  ;;  %2068 = vmatpush.xpose.msk.msrb.mxu3 %vm964_vm1, %v1424_v49 }
 0x535   : > { %2064 = vmatpush.xpose.msk.msrb.mxu2 %vm964_vm1, %v1419_v19  ;;  %2069 = vmatpush.xpose.msk.msrb.mxu3 %vm964_vm1, %v1423_v24 }
 0x539   : > { %1578 = vrot.lane.b32.xlu2 %v2453_v56, %s2168_s24  ;;  %2065 = vmatpush.xpose.msk.msrb.mxu2 %vm964_vm1, %v1418_v22 }
 0x53a   : > { %2070 = vmatpush.xpose.msk.msrb.mxu3 %vm964_vm1, %v1422_v53 }
 0x53d   : > { %2066 = vmatpush.xpose.msk.msrb.mxu2 %vm964_vm1, %v1417_v23 }
 0x53e   : > { %2071 = vmatpush.xpose.msk.msrb.mxu3 %vm964_vm1, %v1421_v25 }
 0x547   : > { %1656 = vrot.lane.b32.xlu1 %v2461_v59, %s2168_s24 }
 0x571   : > { %1377 = vadd.xlane.f32.xlu1 %v1376_v4  ;;  %v2115_v4 = vld [vmem:[%s2756_s16] ss:$0 sm:$0xff] }
 0x58a   : > { %1878 = vrot.lane.b32.xlu1 %v2115_v4, %s2165_s21 }
 0x58c   : > { %v1560_v5 = vpop.xlane.xlu2 %1559 }
 0x58d   : > { %2143 = vrcp.f32 %v1560_v5  ;;  %v2116_v5 = vld [vmem:[%s2755_s15] ss:$0 sm:$0xff] }
 0x593   : > { %v2144_v56 = vpop.eup %2143 }
 0x594   : > { %v1563_v6 = vpop.xlane.xlu2 %1562  ;;  %v1574_v59 = vmul.f32 %v2144_v56, %v2136_v42 }
 0x595   : > { %2145 = vrcp.f32 %v1563_v6 }
 0x599   : > { %v1569_v7 = vpop.xlane.xlu1 %1568 }
 0x59b   : > { %v2146_v8 = vpop.eup %2145 }
 0x59c   : > { %v1575_v9 = vmul.f32 %v2146_v8, %v2138_v62  ;;  %v1579_v10 = vpop.permute.xlu2 %1578 }
 0x59d   : > { %1599 = vmatpush.msra.mxu1 %v1579_v10 }
 0x59e   : > { %2054 = vmatmul.msk.f32.vlgmr.msra.gmra.mxu1 %vm964_vm1, %v1574_v59  ;;  %2055 = vmatmul.msk.f32.vlgmr.msra.gmra.mxu2 %vm964_vm1, %v1575_v9 }
 0x59f   : > { %2058 = vmatpush.xpose.msk.msrb.mxu1 %vm964_vm1, %v1416_v16 }
 0x5a1   : > { %v1566_v35 = vpop.xlane.xlu1 %1565 }
 0x5a2   : > { %2147 = vrcp.f32 %v1566_v35 }
 0x5a3   : > { %2149 = vrcp.f32 %v1569_v7  ;;  %2059 = vmatpush.xpose.msk.msrb.mxu1 %vm964_vm1, %v1415_v18 }
 0x5a4   : > { %2151 = vrcp.f32 %v2169_v52 }
 0x5a7   : > { %2060 = vmatpush.xpose.msk.msrb.mxu1 %vm964_vm1, %v1414_v20 }
 0x5a8   : > { %v2148_v11 = vpop.eup %2147 }
 0x5a9   : > { %v1576_v12 = vmul.f32 %v2148_v11, %v2142_v57  ;;  %v2150_v13 = vpop.eup %2149 }
 0x5aa   : > { %v1577_v14 = vmul.f32 %v2150_v13, %v2140_v54  ;;  %v2152_v54 = vpop.eup %2151 }
 0x5ab   : > { %2056 = vmatmul.msk.f32.vlgmr.msra.gmra.mxu3 %vm964_vm1, %v1576_v12  ;;  %2061 = vmatpush.xpose.msk.msrb.mxu1 %vm964_vm1, %v1413_v21  ;;  %v1380_v55 = vmul.f32 32.0, %v2152_v54  ;;  %vm1384_vm2 = vweird.f32 %v2152_v54 }
 0x5ad   : > { %v1381_v57 = vsub.f32 1.0, %v1380_v55 }
 0x5af   : > { %v1382_v58 = vmul.f32 %v2152_v54, %v1381_v57 }
 0x5b1   : > { %v1383_v60 = vadd.f32 %v2152_v54, %v1382_v58 }
 0x5b3   : > { %v1385_v61 = vsel %vm1384_vm2, %v2152_v54, %v1383_v60 }
 0x5b9   : > { %v1657_v15 = vpop.permute.xlu1 %1656 }
 0x5ba   : > { %1677 = vmatpush.msrb.mxu0 %v1657_v15 }
 0x5bb   : > { %2057 = vmatmul.msk.f32.vlgmr.msrb.gmra.mxu0 %vm964_vm1, %v1577_v14 }
 0x5bc   : > { %2073 = vmatpush.xpose.msk.msra.mxu0 %vm964_vm1, %v1428_v43 }
 0x5c0   : > { %2074 = vmatpush.xpose.msk.msra.mxu0 %vm964_vm1, %v1427_v26 }
 0x5c4   : > { %2075 = vmatpush.xpose.msk.msra.mxu0 %vm964_vm1, %v1426_v50 }
 0x5c8   : > { %2076 = vmatpush.xpose.msk.msra.mxu0 %vm964_vm1, %v1425_v27 }
 0x5e4   : > { %v1378_v6 = vpop.xlane.xlu1 %1377 }
 0x5e5   : > { %v1386_v56 = vmul.f32 %v1385_v61, %v1378_v6 }
 0x5e7   : > { %v1387_v8 = vsub.f32 %v2619_v3, %v1386_v56  ;;  %v1888_v3 = vld [vmem:[%s2757_s17] sm:$0x1] }
 0x5e8   : > { %1890 = vst.msk [vmem:[%s2722_s26] sm:$0x1] %vm1889_vm3, %v1888_v3 }
 0x5e9   : > { %v1388_v9 = vmul.f32 %v1387_v8, %v1387_v8 }
 0x5eb   : > { %v1389_v10 = vsel %vm616_vm0, %v1388_v9, 0.0 }
 0x5fc   : > { %v1879_v22 = vpop.permute.xlu1 %1878 }
 0x61b   : > { %v1601_v28 = vpop.f32.mrf.mxu1 }
 0x61c   : > { %2062 = vmatmul.msk.f32.vlgmr.msrb.gmra.mxu1 %vm964_vm1, %v1601_v28 }
 0x621   : > { %v1627_v29 = vpop.f32.mrf.mxu2 }
 0x622   : > { %2067 = vmatmul.msk.f32.vlgmr.msrb.gmra.mxu2 %vm964_vm1, %v1627_v29 }
 0x62e   : > { %v1653_v30 = vpop.f32.mrf.mxu3 }
 0x62f   : > { %2072 = vmatmul.msk.f32.vlgmr.msrb.gmra.mxu3 %vm964_vm1, %v1653_v30 }
 0x638   : > { %v1679_v31 = vpop.f32.mrf.mxu0 }
 0x639   : > { %2077 = vmatmul.msk.f32.vlgmr.msra.gmra.mxu0 %vm964_vm1, %v1679_v31 }
 0x699   : > { %v1714_v33 = vpop.f32.mrf.mxu1 }
 0x69a   : > { %v1822_v38 = vsel %vm616_vm0, %v1714_v33, 0.0 }
 0x6a5   : > { %v1749_v32 = vpop.f32.mrf.mxu2 }
 0x6a6   : > { %v1823_v34 = vsel %vm616_vm0, %v1749_v32, 0.0  ;;  %v2117_v32 = vld [vmem:[%s2751_s11] ss:$0 sm:$0xff] }
 0x6a7   : > { %v1824_v40 = vadd.f32 %v1823_v34, %v1822_v38  ;;  %v2118_v34 = vld [vmem:[%s2752_s12] ss:$0 sm:$0xff] }
 0x6b2   : > { %v1784_v37 = vpop.f32.mrf.mxu3 }
 0x6b3   : > { %v1825_v39 = vsel %vm616_vm0, %v1784_v37, 0.0 }
 0x6b4   : > { %v1826_v41 = vadd.f32 %v1825_v39, %v1824_v40 }
 0x6b6   : > { %v1819_v42 = vpop.f32.mrf.mxu0 }
 0x6b7   : > { %v1827_v45 = vsel %vm616_vm0, %v1819_v42, 0.0 }
 0x6b8   : > { %v1828_v46 = vadd.f32 %v1827_v45, %v1826_v41 }
 0x6ba   : > { %v1832_v47 = vadd.f32 %v2114_v44, %v1828_v46 }
 0x6bc   : > { %1834 = vrot.lane.b32.xlu0 %v1832_v47, %s2165_s21 }
 0x72e   : > { %v1835_v48 = vpop.permute.xlu0 %1834 }
 0x72f   : > { %v1837_v51 = vadd.f32 %v1835_v48, %v2405_v36 }
 0x731   : > { %1841 = vrot.lane.b32.xlu0 %v1837_v51, %s2166_s30 }
 0x7a3   : > { %v1842_v62 = vpop.permute.xlu0 %1841 }
 0x7a4   : > { %v1844_v1 = vsel %vm616_vm0, %v1842_v62, 0.0 }
 0x7a5   : > { %1845 = vadd.xlane.f32.xlu2 %v1844_v1 }
 0x7bd   : > { %1872 = vrot.lane.b32.xlu2 %v2116_v5, %s2165_s21 }
 0x818   : > { %v1846_v63 = vpop.xlane.xlu2 %1845 }
 0x819   : > { %v1847_v0 = vmul.f32 %v1846_v63, %v1385_v61 }
 0x81b   : > { %v1848_v2 = vsub.f32 %v1837_v51, %v1847_v0 }
 0x81d   : > { %v1849_v36 = vmul.f32 %v1848_v2, %v1848_v2 }
 0x81f   : > { %1851 = vrot.lane.b32.xlu0 %v1849_v36, %s2166_s30 }
 0x820   : > { %v1873_v20 = vpop.permute.xlu2 %1872 }
 0x891   : > { %v1852_v7 = vpop.permute.xlu0 %1851 }
 0x892   : > { %v1854_v59 = vsel %vm616_vm0, %v1852_v7, 0.0 }
 0x893   : > { %1855 = vadd.xlane.f32.xlu0 %v1854_v59 }
 0x89b   : > { %1390 = vadd.xlane.f32.xlu0 %v1389_v10 }
 0x906   : > { %v1856_v35 = vpop.xlane.xlu0 %1855 }
 0x907   : > { %v1857_v11 = vmul.f32 %v1856_v35, %v1385_v61 }
 0x909   : > { %v1858_v12 = vadd.f32 1e-05, %v1857_v11 }
 0x90b   : > { %2153 = vrsqrt.f32 %v1858_v12  ;;  %vm1865_vm5 = vweird.f32 %v1858_v12 }
 0x90e   : > { %v1391_v24 = vpop.xlane.xlu0 %1390 }
 0x90f   : > { %v1392_v43 = vmul.f32 %v1391_v24, %v1385_v61 }
 0x911   : > { %v2154_v13 = vpop.eup %2153  ;;  %v1393_v53 = vadd.f32 1e-05, %v1392_v43 }
 0x912   : > { %v1860_v14 = vmul.f32 %v2154_v13, %v1858_v12  ;;  %vm1866_vm4 = vweird.f32 %v2154_v13 }
 0x913   : > { %vm1867_vm6 = vmor %vm1865_vm5, %vm1866_vm4  ;;  %2155 = vrsqrt.f32 %v1393_v53  ;;  %vm1400_vm8 = vweird.f32 %v1393_v53 }
 0x914   : > { %v1861_v15 = vmul.f32 %v2154_v13, %v1860_v14 }
 0x916   : > { %v1862_v16 = vmul.f32 0.5, %v1861_v15 }
 0x918   : > { %v1863_v17 = vsub.f32 1.5, %v1862_v16 }
 0x919   : > { %v2156_v25 = vpop.eup %2155 }
 0x91a   : > { %v1864_v18 = vmul.f32 %v2154_v13, %v1863_v17  ;;  %v1395_v26 = vmul.f32 %v2156_v25, %v1393_v53  ;;  %vm1401_vm7 = vweird.f32 %v2156_v25 }
 0x91b   : > { %vm1402_vm9 = vmor %vm1400_vm8, %vm1401_vm7 }
 0x91c   : > { %v1868_v19 = vsel %vm1867_vm6, %v2154_v13, %v1864_v18  ;;  %v1396_v50 = vmul.f32 %v2156_v25, %v1395_v26 }
 0x91d   : > { %v1869_v21 = vmul.f32 %v1868_v19, %v1848_v2 }
 0x91e   : > { %v1397_v27 = vmul.f32 0.5, %v1396_v50 }
 0x91f   : > { %v1875_v49 = vmul.f32 %v1873_v20, %v1869_v21 }
 0x920   : > { %v1398_v28 = vsub.f32 1.5, %v1397_v27 }
 0x921   : > { %v1881_v23 = vadd.f32 %v1879_v22, %v1875_v49 }
 0x922   : > { %v1399_v29 = vmul.f32 %v2156_v25, %v1398_v28 }
 0x923   : > { %1883 = vrot.lane.b32.xlu0 %v1881_v23, %s2166_s30 }
 0x924   : > { %v1403_v30 = vsel %vm1402_vm9, %v2156_v25, %v1399_v29 }
 0x925   : > { %v1404_v31 = vmul.f32 %v1403_v30, %v1387_v8 }
 0x927   : > { %v1408_v33 = vmul.f32 %v2117_v32, %v1404_v31 }
 0x929   : > { %v1412_v37 = vadd.f32 %v2118_v34, %v1408_v33 }
 0x995   : > { %v1884_v38 = vpop.permute.xlu0 %1883 }
 0x996   : > { %v1886_v39 = vadd.f32 %v1884_v38, %v1412_v37 }
 0x998   : > { %v1887_v40 = vmul.f32 0.5, %v1886_v39 }
 0x99a   : > { %1891 = vst.msk [vmem:[%s2722_s26 + $0x1] sm:$0xff] %vm616_vm0, %v1887_v40 }
 0x99b PF: > { %s28_s27 = sadd.s32 1, %s2163_s27  }
 0x99c   : > { %p25_p4 = scmp.ge.s32.totalorder %s28_s27, 4  }
 0x99e   :  { %27 = sbr.rel (!%p25_p4) target bundleno = 4 (0x4), region = 128 }

</bundles_post_ra>
